<compile_context>
chip_gen: v5e
topology: v5e:2x2
jax: 0.10.0
libtpu: 0.0.40
codegen_flags: <defaults>
</compile_context>

<pallas_src>
from functools import lru_cache, partial

import numpy as np
import jax
import jax.numpy as jnp
from jax.experimental import pallas as pl
from jax.experimental.pallas import tpu as pltpu

OUT_SIZE = 44                      # torchvision resize target (smaller edge)
GRAY_W = (0.2989, 0.587, 0.114)    # torchvision Grayscale RGB weights
NORM1_STD = 255.0                  # Normalize(0.0, 255.0)
NORM2_MEAN, NORM2_STD = 0.421, 0.165

# Folded constants:
#   out = sum_c (g_c / (255 * 0.165)) * resize(x_c)  -  0.421 / 0.165
CH_W = tuple(g / (NORM1_STD * NORM2_STD) for g in GRAY_W)
BIAS = -NORM2_MEAN / NORM2_STD


# ----------------------------------------------------------------------------
# Host-side: antialiased bilinear resize as separable matrices (PIL/torchvision
# triangle filter, same semantics as resize(..., antialias=True)).
# ----------------------------------------------------------------------------
def _resize_matrix(in_size: int, out_size: int) -> np.ndarray:
    scale = in_size / out_size
    filt_scale = max(scale, 1.0)
    support = 1.0 * filt_scale                       # bilinear support = 1
    mat = np.zeros((out_size, in_size), np.float32)
    for i in range(out_size):
        center = (i + 0.5) * scale
        lo = max(int(np.floor(center - support)), 0)
        hi = min(int(np.ceil(center + support)) + 1, in_size)
        js = np.arange(lo, hi)
        x = (js + 0.5 - center) / filt_scale
        w = np.clip(1.0 - np.abs(x), 0.0, None)
        s = w.sum()
        if s > 0:
            w = w / s
        mat[i, js] = w
    return mat


@lru_cache(maxsize=None)
def _resize_matrices(h: int, w: int):
    # Cached per ROI resolution; uploaded once per jit compilation as constants.
    l_mat = _resize_matrix(h, OUT_SIZE)            # (44, H)
    r_mat = _resize_matrix(w, OUT_SIZE).T.copy()   # (W, 44)
    return l_mat, r_mat


# ----------------------------------------------------------------------------
# Pallas kernels
# ----------------------------------------------------------------------------
def _video_kernel(v_ref, l_ref, r_ref, o_ref, a_scr, b_scr, y_scr):
    # v_ref : (t_blk, 3, H, W) f32   natural layout; channel slices are free
    # l_ref : (44, H)  bf16          row-resize matrix
    # r_ref : (W, 44)  bf16          col-resize matrix
    # o_ref : (t_blk, 44, 44) f32
    # a_scr : (t_blk*H, 44) bf16     stage-1 result
    # b_scr : (H, t_blk*44) bf16     de-interleaved stage-1 result
    # y_scr : (44, t_blk*44) f32     stage-2 result (+ bias)
    t_blk = v_ref.shape[0]
    h, w = v_ref.shape[2], v_ref.shape[3]

    # Grayscale with all normalization scales folded in (f32 VPU; exact for
    # uint8-valued pixels; v5e has no bf16 VALU so keep the fold in f32).
    gray = (CH_W[0] * v_ref[:, 0]
            + CH_W[1] * v_ref[:, 1]
            + CH_W[2] * v_ref[:, 2])                        # (t_blk, H, W) f32

    # Stage 1: stacked column resize — one big-M bf16 MXU matmul per block.
    a_scr[...] = jnp.dot(
        gray.reshape(t_blk * h, w).astype(jnp.bfloat16),
        r_ref[...],
        preferred_element_type=jnp.float32,
    ).astype(jnp.bfloat16)                                  # (t_blk*H, 44)

    # De-interleave (t*H, 44) -> (H, t*44) with static ref-slice copies
    # (sublane-aligned reads, masked lane writes; ~45 KiB of VPU traffic),
    # so stage 2 is a single matmul instead of t_blk MXU fill/drains.
    for t in range(t_blk):
        b_scr[:, t * OUT_SIZE:(t + 1) * OUT_SIZE] = a_scr[t * h:(t + 1) * h, :]

    # Stage 2: row resize for all frames fused into one MXU matmul + bias.
    y_scr[...] = jnp.dot(l_ref[...], b_scr[...],
                         preferred_element_type=jnp.float32) + BIAS

    # Re-interleave into the (t_blk, 44, 44) output block (ref slices are free,
    # keeps vreg pressure flat regardless of t_blk).
    for t in range(t_blk):
        o_ref[t] = y_scr[:, t * OUT_SIZE:(t + 1) * OUT_SIZE]


def _audio_kernel(a_ref, o_ref):
    # a_ref: (n_blk, C) -> channel mean -> o_ref: (n_blk, 1)
    o_ref[...] = jnp.mean(a_ref[...], axis=1, keepdims=True)


# ----------------------------------------------------------------------------
# Wrappers
# ----------------------------------------------------------------------------
@partial(jax.jit, static_argnames=("t_blk",))
def video_transform(video: jax.Array, t_blk: int = 32) -> jax.Array:
    """video: (T, 3, H, W) float32 in [0, 255] -> (T, 1, 44, 44) float32."""
    T, C, H, W = video.shape
    assert C == 3 and H == W, "square RGB frames expected"
    # Keep H a multiple of 16 (bf16 sublane packing) to avoid relayout copies
    # on the per-frame slices of the stage-1 result.
    assert H % 16 == 0, "ROI height/width should be a multiple of 16"

    # Block size: big blocks amortize grid overhead, but keep >=2 grid steps so
    # v7x can shard frames across its two TensorCores.
    tb = min(t_blk, T)
    if T > 1 and pl.cdiv(T, tb) < 2:
        tb = pl.cdiv(T, 2)

    l_np, r_np = _resize_matrices(H, W)
    # bf16 MXU operands (exact for 8-bit pixel data; weights tolerate ~1e-3).
    l_bf = jnp.asarray(l_np, dtype=jnp.bfloat16)            # (44, H)
    r_bf = jnp.asarray(r_np, dtype=jnp.bfloat16)            # (W, 44)

    # VMEM budget (64x64 ROI, tb=32): 2 x 1.5 MiB input + scratches ~0.4 MiB
    # -> well under the default scoped VMEM on v5e/v6e/v7x; no override needed.
    out = pl.pallas_call(
        _video_kernel,
        out_shape=jax.ShapeDtypeStruct((T, OUT_SIZE, OUT_SIZE), jnp.float32),
        grid_spec=pltpu.PrefetchScalarGridSpec(
            num_scalar_prefetch=0,
            grid=(pl.cdiv(T, tb),),
            in_specs=[
                pl.BlockSpec((tb, C, H, W), lambda t: (t, 0, 0, 0)),
                pl.BlockSpec((OUT_SIZE, H), lambda t: (0, 0)),
                pl.BlockSpec((W, OUT_SIZE), lambda t: (0, 0)),
            ],
            out_specs=pl.BlockSpec((tb, OUT_SIZE, OUT_SIZE),
                                   lambda t: (t, 0, 0)),
            scratch_shapes=[
                pltpu.VMEM((tb * H, OUT_SIZE), jnp.bfloat16),
                pltpu.VMEM((H, tb * OUT_SIZE), jnp.bfloat16),
                pltpu.VMEM((OUT_SIZE, tb * OUT_SIZE), jnp.float32),
            ],
        ),
        compiler_params=pltpu.CompilerParams(
            dimension_semantics=("parallel",)),
    )(video, l_bf, r_bf)

    return out.reshape(T, 1, OUT_SIZE, OUT_SIZE)


@partial(jax.jit, static_argnames=("n_blk",))
def audio_transform(audio: jax.Array, n_blk: int = 32 * 1024) -> jax.Array:
    """audio: (N, C) float32 -> (N, 1) float32 (channel mean)."""
    N, C = audio.shape
    nb = min(n_blk, N)
    if nb != N:
        nb = max((nb // 8) * 8, 8)        # sublane-aligned row blocks

    out = pl.pallas_call(
        _audio_kernel,
        out_shape=jax.ShapeDtypeStruct((N, 1), jnp.float32),
        grid_spec=pltpu.PrefetchScalarGridSpec(
            num_scalar_prefetch=0,
            grid=(pl.cdiv(N, nb),),
            in_specs=[pl.BlockSpec((nb, C), lambda i: (i, 0))],
            out_specs=pl.BlockSpec((nb, 1), lambda i: (i, 0)),
        ),
        compiler_params=pltpu.CompilerParams(
            dimension_semantics=("parallel",)),
    )(audio)
    return out


def preprocessing_forward(audio: jax.Array, video: jax.Array):
    """Mirrors Preprocessing.forward(audio, video) -> (audio, video)."""
    # TODO(synk): LandmarksDetector / VideoProcess (face detection + ROI crop)
    # run upstream; `video` here is the already-cropped ROI clip.
    video_out = video_transform(video)
    audio_out = audio_transform(audio)
    return audio_out, video_out


# ----------------------------------------------------------------------------
# Pure-JAX f32 reference (same math, unfolded) for a tolerance check.
# ----------------------------------------------------------------------------
def _video_reference(video: jax.Array) -> jax.Array:
    Lr = jnp.asarray(_resize_matrix(video.shape[2], OUT_SIZE))   # (44, H)
    Rr = jnp.asarray(_resize_matrix(video.shape[3], OUT_SIZE))   # (44, W)
    gray = (GRAY_W[0] * video[:, 0] + GRAY_W[1] * video[:, 1]
            + GRAY_W[2] * video[:, 2]) / NORM1_STD
    y = jnp.einsum("oh,thw,nw->ton", Lr, gray, Rr)
    return ((y - NORM2_MEAN) / NORM2_STD)[:, None, :, :]


# ----------------------------------------------------------------------------
if __name__ == "__main__":
    key = jax.random.PRNGKey(0)
    k_v, k_a = jax.random.split(key)

    # 16 RGB ROI frames of 64x64 (uint8-valued floats), 2048 stereo samples.
    video = jnp.floor(
        jax.random.uniform(k_v, (16, 3, 64, 64), minval=0.0, maxval=256.0)
    ).astype(jnp.float32)
    audio = jax.random.normal(k_a, (2048, 2), dtype=jnp.float32)

    audio_out, video_out = preprocessing_forward(audio, video)
    jax.block_until_ready((audio_out, video_out))

    assert audio_out.shape == (2048, 1)
    assert video_out.shape == (16, 1, OUT_SIZE, OUT_SIZE)

    # Correctness vs f32 reference (loose tolerance for bf16 MXU operands).
    v_ref = _video_reference(video)
    a_ref = jnp.mean(audio, axis=-1, keepdims=True)
    v_err = float(jnp.max(jnp.abs(video_out - v_ref)))
    a_err = float(jnp.max(jnp.abs(audio_out - a_ref)))
    assert v_err < 0.15, f"video max|err| = {v_err}"
    assert a_err < 1e-5, f"audio max|err| = {a_err}"

    print("KERNEL_OK")
</pallas_src>

<mosaic_0001>
module attributes {stable_mosaic.version = 11 : i64} {
  func.func @_video_kernel(%arg0: i32, %arg1: memref<8x3x64x64xf32, #tpu.memory_space<vmem>>, %arg2: memref<44x64xbf16, #tpu.memory_space<vmem>>, %arg3: memref<64x44xbf16, #tpu.memory_space<vmem>>, %arg4: memref<8x44x44xf32, #tpu.memory_space<vmem>>, %arg5: memref<512x44xbf16, #tpu.memory_space<vmem>>, %arg6: memref<64x352xbf16, #tpu.memory_space<vmem>>, %arg7: memref<44x352xf32, #tpu.memory_space<vmem>>) attributes {dimension_semantics = [#tpu.dimension_semantics<parallel>], iteration_bounds = array<i64: 2>, scalar_prefetch = 0 : i64, scratch_operands = 3 : i64, tpu.core_type = #tpu.core_type<tc>, window_params = [{transform_indices = @transform_0, window_bounds = array<i64: 8, 3, 64, 64>}, {pipeline_mode = #tpu.pipeline_mode<synchronous>, transform_indices = @transform_1, window_bounds = array<i64: 44, 64>}, {pipeline_mode = #tpu.pipeline_mode<synchronous>, transform_indices = @transform_2, window_bounds = array<i64: 64, 44>}, {transform_indices = @transform_3, window_bounds = array<i64: 8, 44, 44>}]} {
    %c0 = arith.constant 0 : index
    %c0_0 = arith.constant 0 : index
    %c0_1 = arith.constant 0 : index
    %c0_2 = arith.constant 0 : index
    %0 = vector.load %arg1[%c0, %c0_0, %c0_1, %c0_2] : memref<8x3x64x64xf32, #tpu.memory_space<vmem>>, vector<8x1x64x64xf32>
    %1 = vector.shape_cast %0 : vector<8x1x64x64xf32> to vector<8x64x64xf32>
    %cst = arith.constant 0.00710398098 : f32
    %2 = vector.broadcast %cst : f32 to vector<8x64x64xf32>
    %3 = arith.mulf %2, %1 : vector<8x64x64xf32>
    %c0_3 = arith.constant 0 : index
    %c1 = arith.constant 1 : index
    %c0_4 = arith.constant 0 : index
    %c0_5 = arith.constant 0 : index
    %4 = vector.load %arg1[%c0_3, %c1, %c0_4, %c0_5] : memref<8x3x64x64xf32, #tpu.memory_space<vmem>>, vector<8x1x64x64xf32>
    %5 = vector.shape_cast %4 : vector<8x1x64x64xf32> to vector<8x64x64xf32>
    %cst_6 = arith.constant 0.0139512774 : f32
    %6 = vector.broadcast %cst_6 : f32 to vector<8x64x64xf32>
    %7 = arith.mulf %6, %5 : vector<8x64x64xf32>
    %8 = arith.addf %3, %7 : vector<8x64x64xf32>
    %c0_7 = arith.constant 0 : index
    %c2 = arith.constant 2 : index
    %c0_8 = arith.constant 0 : index
    %c0_9 = arith.constant 0 : index
    %9 = vector.load %arg1[%c0_7, %c2, %c0_8, %c0_9] : memref<8x3x64x64xf32, #tpu.memory_space<vmem>>, vector<8x1x64x64xf32>
    %10 = vector.shape_cast %9 : vector<8x1x64x64xf32> to vector<8x64x64xf32>
    %cst_10 = arith.constant 0.00270944741 : f32
    %11 = vector.broadcast %cst_10 : f32 to vector<8x64x64xf32>
    %12 = arith.mulf %11, %10 : vector<8x64x64xf32>
    %13 = arith.addf %8, %12 : vector<8x64x64xf32>
    %14 = vector.shape_cast %13 : vector<8x64x64xf32> to vector<512x64xf32>
    %15 = arith.truncf %14 : vector<512x64xf32> to vector<512x64xbf16>
    %c0_11 = arith.constant 0 : index
    %c0_12 = arith.constant 0 : index
    %16 = vector.load %arg3[%c0_11, %c0_12] : memref<64x44xbf16, #tpu.memory_space<vmem>>, vector<64x44xbf16>
    %cst_13 = arith.constant dense<0.000000e+00> : vector<512x44xf32>
    %17 = tpu.matmul %15, %16, %cst_13 {dimension_numbers = #tpu.dot_dimension_numbers<[1], [0], [0], [1], [0, 0, 1, 1], [], []>} : vector<512x64xbf16>, vector<64x44xbf16>, vector<512x44xf32> -> vector<512x44xf32>
    %18 = arith.truncf %17 : vector<512x44xf32> to vector<512x44xbf16>
    %c0_14 = arith.constant 0 : index
    %c0_15 = arith.constant 0 : index
    %19 = vector.load %arg5[%c0_14, %c0_15] : memref<512x44xbf16, #tpu.memory_space<vmem>>, vector<512x44xbf16>
    tpu.vector_store %arg5[%c0_14, %c0_15], %18 {strides = array<i32>} : memref<512x44xbf16, #tpu.memory_space<vmem>>, vector<512x44xbf16>,
    %c0_16 = arith.constant 0 : index
    %c0_17 = arith.constant 0 : index
    %20 = vector.load %arg5[%c0_16, %c0_17] : memref<512x44xbf16, #tpu.memory_space<vmem>>, vector<64x44xbf16>
    %c0_18 = arith.constant 0 : index
    %c0_19 = arith.constant 0 : index
    %21 = vector.load %arg6[%c0_18, %c0_19] : memref<64x352xbf16, #tpu.memory_space<vmem>>, vector<64x44xbf16>
    tpu.vector_store %arg6[%c0_18, %c0_19], %20 {strides = array<i32>} : memref<64x352xbf16, #tpu.memory_space<vmem>>, vector<64x44xbf16>,
    %c64 = arith.constant 64 : index
    %c0_20 = arith.constant 0 : index
    %22 = vector.load %arg5[%c64, %c0_20] : memref<512x44xbf16, #tpu.memory_space<vmem>>, vector<64x44xbf16>
    %c0_21 = arith.constant 0 : index
    %c44 = arith.constant 44 : index
    %23 = vector.load %arg6[%c0_21, %c44] : memref<64x352xbf16, #tpu.memory_space<vmem>>, vector<64x44xbf16>
    tpu.vector_store %arg6[%c0_21, %c44], %22 {strides = array<i32>} : memref<64x352xbf16, #tpu.memory_space<vmem>>, vector<64x44xbf16>,
    %c128 = arith.constant 128 : index
    %c0_22 = arith.constant 0 : index
    %24 = vector.load %arg5[%c128, %c0_22] : memref<512x44xbf16, #tpu.memory_space<vmem>>, vector<64x44xbf16>
    %c0_23 = arith.constant 0 : index
    %c88 = arith.constant 88 : index
    %25 = vector.load %arg6[%c0_23, %c88] : memref<64x352xbf16, #tpu.memory_space<vmem>>, vector<64x44xbf16>
    tpu.vector_store %arg6[%c0_23, %c88], %24 {strides = array<i32>} : memref<64x352xbf16, #tpu.memory_space<vmem>>, vector<64x44xbf16>,
    %c192 = arith.constant 192 : index
    %c0_24 = arith.constant 0 : index
    %26 = vector.load %arg5[%c192, %c0_24] : memref<512x44xbf16, #tpu.memory_space<vmem>>, vector<64x44xbf16>
    %c0_25 = arith.constant 0 : index
    %c132 = arith.constant 132 : index
    %27 = vector.load %arg6[%c0_25, %c132] : memref<64x352xbf16, #tpu.memory_space<vmem>>, vector<64x44xbf16>
    tpu.vector_store %arg6[%c0_25, %c132], %26 {strides = array<i32>} : memref<64x352xbf16, #tpu.memory_space<vmem>>, vector<64x44xbf16>,
    %c256 = arith.constant 256 : index
    %c0_26 = arith.constant 0 : index
    %28 = vector.load %arg5[%c256, %c0_26] : memref<512x44xbf16, #tpu.memory_space<vmem>>, vector<64x44xbf16>
    %c0_27 = arith.constant 0 : index
    %c176 = arith.constant 176 : index
    %29 = vector.load %arg6[%c0_27, %c176] : memref<64x352xbf16, #tpu.memory_space<vmem>>, vector<64x44xbf16>
    tpu.vector_store %arg6[%c0_27, %c176], %28 {strides = array<i32>} : memref<64x352xbf16, #tpu.memory_space<vmem>>, vector<64x44xbf16>,
    %c320 = arith.constant 320 : index
    %c0_28 = arith.constant 0 : index
    %30 = vector.load %arg5[%c320, %c0_28] : memref<512x44xbf16, #tpu.memory_space<vmem>>, vector<64x44xbf16>
    %c0_29 = arith.constant 0 : index
    %c220 = arith.constant 220 : index
    %31 = vector.load %arg6[%c0_29, %c220] : memref<64x352xbf16, #tpu.memory_space<vmem>>, vector<64x44xbf16>
    tpu.vector_store %arg6[%c0_29, %c220], %30 {strides = array<i32>} : memref<64x352xbf16, #tpu.memory_space<vmem>>, vector<64x44xbf16>,
    %c384 = arith.constant 384 : index
    %c0_30 = arith.constant 0 : index
    %32 = vector.load %arg5[%c384, %c0_30] : memref<512x44xbf16, #tpu.memory_space<vmem>>, vector<64x44xbf16>
    %c0_31 = arith.constant 0 : index
    %c264 = arith.constant 264 : index
    %33 = vector.load %arg6[%c0_31, %c264] : memref<64x352xbf16, #tpu.memory_space<vmem>>, vector<64x44xbf16>
    tpu.vector_store %arg6[%c0_31, %c264], %32 {strides = array<i32>} : memref<64x352xbf16, #tpu.memory_space<vmem>>, vector<64x44xbf16>,
    %c448 = arith.constant 448 : index
    %c0_32 = arith.constant 0 : index
    %34 = vector.load %arg5[%c448, %c0_32] : memref<512x44xbf16, #tpu.memory_space<vmem>>, vector<64x44xbf16>
    %c0_33 = arith.constant 0 : index
    %c308 = arith.constant 308 : index
    %35 = vector.load %arg6[%c0_33, %c308] : memref<64x352xbf16, #tpu.memory_space<vmem>>, vector<64x44xbf16>
    tpu.vector_store %arg6[%c0_33, %c308], %34 {strides = array<i32>} : memref<64x352xbf16, #tpu.memory_space<vmem>>, vector<64x44xbf16>,
    %c0_34 = arith.constant 0 : index
    %c0_35 = arith.constant 0 : index
    %36 = vector.load %arg2[%c0_34, %c0_35] : memref<44x64xbf16, #tpu.memory_space<vmem>>, vector<44x64xbf16>
    %c0_36 = arith.constant 0 : index
    %c0_37 = arith.constant 0 : index
    %37 = vector.load %arg6[%c0_36, %c0_37] : memref<64x352xbf16, #tpu.memory_space<vmem>>, vector<64x352xbf16>
    %cst_38 = arith.constant dense<0.000000e+00> : vector<44x352xf32>
    %38 = tpu.matmul %36, %37, %cst_38 {dimension_numbers = #tpu.dot_dimension_numbers<[1], [0], [0], [1], [0, 0, 1, 1], [], []>} : vector<44x64xbf16>, vector<64x352xbf16>, vector<44x352xf32> -> vector<44x352xf32>
    %cst_39 = arith.constant -2.5515151 : f32
    %39 = vector.broadcast %cst_39 : f32 to vector<44x352xf32>
    %40 = arith.addf %38, %39 : vector<44x352xf32>
    %c0_40 = arith.constant 0 : index
    %c0_41 = arith.constant 0 : index
    %41 = vector.load %arg7[%c0_40, %c0_41] : memref<44x352xf32, #tpu.memory_space<vmem>>, vector<44x352xf32>
    tpu.vector_store %arg7[%c0_40, %c0_41], %40 {strides = array<i32>} : memref<44x352xf32, #tpu.memory_space<vmem>>, vector<44x352xf32>,
    %c0_42 = arith.constant 0 : index
    %c0_43 = arith.constant 0 : index
    %42 = vector.load %arg7[%c0_42, %c0_43] : memref<44x352xf32, #tpu.memory_space<vmem>>, vector<44x44xf32>
    %c0_44 = arith.constant 0 : index
    %c0_45 = arith.constant 0 : index
    %c0_46 = arith.constant 0 : index
    %43 = vector.load %arg4[%c0_44, %c0_45, %c0_46] : memref<8x44x44xf32, #tpu.memory_space<vmem>>, vector<1x44x44xf32>
    %44 = vector.shape_cast %43 : vector<1x44x44xf32> to vector<44x44xf32>
    %45 = vector.shape_cast %42 : vector<44x44xf32> to vector<1x44x44xf32>
    tpu.vector_store %arg4[%c0_44, %c0_45, %c0_46], %45 {strides = array<i32>} : memref<8x44x44xf32, #tpu.memory_space<vmem>>, vector<1x44x44xf32>,
    %c0_47 = arith.constant 0 : index
    %c44_48 = arith.constant 44 : index
    %46 = vector.load %arg7[%c0_47, %c44_48] : memref<44x352xf32, #tpu.memory_space<vmem>>, vector<44x44xf32>
    %c1_49 = arith.constant 1 : index
    %c0_50 = arith.constant 0 : index
    %c0_51 = arith.constant 0 : index
    %47 = vector.load %arg4[%c1_49, %c0_50, %c0_51] : memref<8x44x44xf32, #tpu.memory_space<vmem>>, vector<1x44x44xf32>
    %48 = vector.shape_cast %47 : vector<1x44x44xf32> to vector<44x44xf32>
    %49 = vector.shape_cast %46 : vector<44x44xf32> to vector<1x44x44xf32>
    tpu.vector_store %arg4[%c1_49, %c0_50, %c0_51], %49 {strides = array<i32>} : memref<8x44x44xf32, #tpu.memory_space<vmem>>, vector<1x44x44xf32>,
    %c0_52 = arith.constant 0 : index
    %c88_53 = arith.constant 88 : index
    %50 = vector.load %arg7[%c0_52, %c88_53] : memref<44x352xf32, #tpu.memory_space<vmem>>, vector<44x44xf32>
    %c2_54 = arith.constant 2 : index
    %c0_55 = arith.constant 0 : index
    %c0_56 = arith.constant 0 : index
    %51 = vector.load %arg4[%c2_54, %c0_55, %c0_56] : memref<8x44x44xf32, #tpu.memory_space<vmem>>, vector<1x44x44xf32>
    %52 = vector.shape_cast %51 : vector<1x44x44xf32> to vector<44x44xf32>
    %53 = vector.shape_cast %50 : vector<44x44xf32> to vector<1x44x44xf32>
    tpu.vector_store %arg4[%c2_54, %c0_55, %c0_56], %53 {strides = array<i32>} : memref<8x44x44xf32, #tpu.memory_space<vmem>>, vector<1x44x44xf32>,
    %c0_57 = arith.constant 0 : index
    %c132_58 = arith.constant 132 : index
    %54 = vector.load %arg7[%c0_57, %c132_58] : memref<44x352xf32, #tpu.memory_space<vmem>>, vector<44x44xf32>
    %c3 = arith.constant 3 : index
    %c0_59 = arith.constant 0 : index
    %c0_60 = arith.constant 0 : index
    %55 = vector.load %arg4[%c3, %c0_59, %c0_60] : memref<8x44x44xf32, #tpu.memory_space<vmem>>, vector<1x44x44xf32>
    %56 = vector.shape_cast %55 : vector<1x44x44xf32> to vector<44x44xf32>
    %57 = vector.shape_cast %54 : vector<44x44xf32> to vector<1x44x44xf32>
    tpu.vector_store %arg4[%c3, %c0_59, %c0_60], %57 {strides = array<i32>} : memref<8x44x44xf32, #tpu.memory_space<vmem>>, vector<1x44x44xf32>,
    %c0_61 = arith.constant 0 : index
    %c176_62 = arith.constant 176 : index
    %58 = vector.load %arg7[%c0_61, %c176_62] : memref<44x352xf32, #tpu.memory_space<vmem>>, vector<44x44xf32>
    %c4 = arith.constant 4 : index
    %c0_63 = arith.constant 0 : index
    %c0_64 = arith.constant 0 : index
    %59 = vector.load %arg4[%c4, %c0_63, %c0_64] : memref<8x44x44xf32, #tpu.memory_space<vmem>>, vector<1x44x44xf32>
    %60 = vector.shape_cast %59 : vector<1x44x44xf32> to vector<44x44xf32>
    %61 = vector.shape_cast %58 : vector<44x44xf32> to vector<1x44x44xf32>
    tpu.vector_store %arg4[%c4, %c0_63, %c0_64], %61 {strides = array<i32>} : memref<8x44x44xf32, #tpu.memory_space<vmem>>, vector<1x44x44xf32>,
    %c0_65 = arith.constant 0 : index
    %c220_66 = arith.constant 220 : index
    %62 = vector.load %arg7[%c0_65, %c220_66] : memref<44x352xf32, #tpu.memory_space<vmem>>, vector<44x44xf32>
    %c5 = arith.constant 5 : index
    %c0_67 = arith.constant 0 : index
    %c0_68 = arith.constant 0 : index
    %63 = vector.load %arg4[%c5, %c0_67, %c0_68] : memref<8x44x44xf32, #tpu.memory_space<vmem>>, vector<1x44x44xf32>
    %64 = vector.shape_cast %63 : vector<1x44x44xf32> to vector<44x44xf32>
    %65 = vector.shape_cast %62 : vector<44x44xf32> to vector<1x44x44xf32>
    tpu.vector_store %arg4[%c5, %c0_67, %c0_68], %65 {strides = array<i32>} : memref<8x44x44xf32, #tpu.memory_space<vmem>>, vector<1x44x44xf32>,
    %c0_69 = arith.constant 0 : index
    %c264_70 = arith.constant 264 : index
    %66 = vector.load %arg7[%c0_69, %c264_70] : memref<44x352xf32, #tpu.memory_space<vmem>>, vector<44x44xf32>
    %c6 = arith.constant 6 : index
    %c0_71 = arith.constant 0 : index
    %c0_72 = arith.constant 0 : index
    %67 = vector.load %arg4[%c6, %c0_71, %c0_72] : memref<8x44x44xf32, #tpu.memory_space<vmem>>, vector<1x44x44xf32>
    %68 = vector.shape_cast %67 : vector<1x44x44xf32> to vector<44x44xf32>
    %69 = vector.shape_cast %66 : vector<44x44xf32> to vector<1x44x44xf32>
    tpu.vector_store %arg4[%c6, %c0_71, %c0_72], %69 {strides = array<i32>} : memref<8x44x44xf32, #tpu.memory_space<vmem>>, vector<1x44x44xf32>,
    %c0_73 = arith.constant 0 : index
    %c308_74 = arith.constant 308 : index
    %70 = vector.load %arg7[%c0_73, %c308_74] : memref<44x352xf32, #tpu.memory_space<vmem>>, vector<44x44xf32>
    %c7 = arith.constant 7 : index
    %c0_75 = arith.constant 0 : index
    %c0_76 = arith.constant 0 : index
    %71 = vector.load %arg4[%c7, %c0_75, %c0_76] : memref<8x44x44xf32, #tpu.memory_space<vmem>>, vector<1x44x44xf32>
    %72 = vector.shape_cast %71 : vector<1x44x44xf32> to vector<44x44xf32>
    %73 = vector.shape_cast %70 : vector<44x44xf32> to vector<1x44x44xf32>
    tpu.vector_store %arg4[%c7, %c0_75, %c0_76], %73 {strides = array<i32>} : memref<8x44x44xf32, #tpu.memory_space<vmem>>, vector<1x44x44xf32>,
    return
  }
  func.func @transform_0(%arg0: i32) -> (i32, i32, i32, i32) {
    %c0_i32 = arith.constant 0 : i32
    %c0_i32_0 = arith.constant 0 : i32
    %c0_i32_1 = arith.constant 0 : i32
    %c0_i32_2 = arith.constant 0 : i32
    return %arg0, %c0_i32, %c0_i32_0, %c0_i32_1 : i32, i32, i32, i32
  }
  func.func @transform_1(%arg0: i32) -> (i32, i32) {
    %c0_i32 = arith.constant 0 : i32
    %c0_i32_0 = arith.constant 0 : i32
    %c0_i32_1 = arith.constant 0 : i32
    return %c0_i32, %c0_i32_0 : i32, i32
  }
  func.func @transform_2(%arg0: i32) -> (i32, i32) {
    %c0_i32 = arith.constant 0 : i32
    %c0_i32_0 = arith.constant 0 : i32
    %c0_i32_1 = arith.constant 0 : i32
    return %c0_i32, %c0_i32_0 : i32, i32
  }
  func.func @transform_3(%arg0: i32) -> (i32, i32, i32) {
    %c0_i32 = arith.constant 0 : i32
    %c0_i32_0 = arith.constant 0 : i32
    %c0_i32_1 = arith.constant 0 : i32
    return %arg0, %c0_i32, %c0_i32_0 : i32, i32, i32
  }
}

</mosaic_0001>

<bundles_post_ra>
// kernel: video_transform.1
= control target key start
LH: loop header
LB: loop body
LE: loop exit
PB: predicated region body
PF: predicated region fallthrough
CT: control target
= control target key end

     0   :  { %8 = vsyncpa [#allocation6], 0  ;;  %s3647_s0 = inlined_call_operand.hbm [shape: f32[16,3,64,64], index: 0, kind: input, shape index: {}]   ;;  %s3648_s1 = inlined_call_operand.hbm [shape: bf16[44,64], index: 1, kind: input, shape index: {}]   ;;  %s3649_s2 = inlined_call_operand.hbm [shape: bf16[64,44], index: 2, kind: input, shape index: {}]   ;;  %s3650_s3 = inlined_call_operand.vmem [shape: f32[16,44,44], index: 3, kind: output, shape index: {}]  }
   0x1   :  { %10 = vsyncpa [#allocation6 + $0x1], 0 }
   0x2   :  { %11 = vsyncpa [#allocation8], 0  ;;  %s2812_s12 = smov 0   ;;  %s2814_s13 = smov 0  }
   0x3   :  { %s2816_s14 = smov 0   ;;  %s2818_s15 = smov 0  }
   0x4 LB: > { %s2226_s16 = sadd.s32 4294967295, %s2770_s15   ;;  %p37_p0 = scmp.ne.s32.totalorder %s2762_s13, %s2758_s12  ;;  %s2770_s15 = sphi %s2818_s15, %s3662_s15   ;;  %s2766_s14 = sphi %s2816_s14, %s3661_s14   ;;  %s2762_s13 = sphi %s2814_s13, %s3660_s13   ;;  %s2758_s12 = sphi %s2812_s12, %s3659_s12  }
   0x5   : > { %p2834_p1 = scmp.eq.s32.totalorder %s2226_s16, 0  ;;  %p2228_p2 = scmp.ge.s32.totalorder %s2770_s15, 1 }
   0x6   : > { %p116_p3 = scmp.lt.s32.totalorder %s2770_s15, 3  ;;  %s127_s21 = sshll.u32 %s3648_s1, 4  ;;  %s128_s21 = int_to_ptr.hbm [resolvable:$true] %s127_s21 }
   0x7   : > { %p2842_p4 = por %p2834_p1, %p37_p0  ;;  %s2772_s23 = smov [#allocation7]  }
   0x8   : > { %p2849_p5 = pnand %p2228_p2, %p116_p3  ;;  %s129_s24 = sshll.u32 %s2772_s23, 4  ;;  %s130_s24 = int_to_ptr.vmem [resolvable:$true] %s129_s24 }
   0x9   : > { %s141_s27 = sshll.u32 %s3649_s2, 4  ;;  %s2773_s28 = smov 64   ;;  %s142_s27 = int_to_ptr.hbm [resolvable:$true] %s141_s27 }
   0xa   : > { %p2574_p6 = pneg %p2849_p5  ;;  %s2774_s29 = smov 4  }
   0xb   : > { %s2775_s30 = smov [#allocation9]   ;;  %s2861_s5 = sadd.s32 1, %s2770_s15  }
   0xc   : > { %p2575_p7 = pnand %p2574_p6, %p2834_p1  ;;  %s143_s4 = sshll.u32 %s2775_s30, 4  ;;  %s144_s4 = int_to_ptr.vmem [resolvable:$true] %s143_s4 }
   0xd   : > { %s24_s6 = sadd.s32 1, %s2766_s14  ;;  %s21_s7 = ssub.s32 %s2770_s15, %s2861_s5 }
   0xe   : > { %2577 = dma.hbm_to_vmem [thread:$0]  (!%p2575_p7), %s128_s21, 384, %s130_s24, [#allocation8], %s2773_s28, %s2773_s28, %s2774_s29  }
   0xf   : > { %2580 = dma.hbm_to_vmem [thread:$0]  (!%p2575_p7), %s142_s27, 512, %s144_s4, [#allocation8], %s2773_s28, %s2773_s28, %s2774_s29  }
  0x10   : > { %p31_p8 = scmp.ne.s32.totalorder %s2766_s14, %s2762_s13  ;;  %p22_p9 = scmp.eq.s32.totalorder %s21_s7, 0 }
  0x11   : > { %p32_p10 = scmp.eq.s32.totalorder %s2770_s15, 0  ;;  %p2587_p11 = scmp.lt.s32.totalorder %s2770_s15, 2 }
  0x12   : > { %s157_s8 = sand.u32 1, %s2766_s14   ;;  %s2561_s11 = smul.u32 1536, %s2770_s15 }
  0x13   : > { %s2872_s9 = scalar_select %p22_p9, %s2766_s14, %s24_s6  }
  0x14   : > { %p33_p12 = por %p32_p10, %p31_p8  ;;  %s2560_s10 = smul.u32 1536, %s157_s8 }
  0x15   : > { %s167_s21 = scalar_lea.hbm %s3647_s0, %s2561_s11  ;;  %s158_s26 = scalar_lea.sflag [#allocation6], %s157_s8 }
  0x16   : > { %p2875_p13 = pnand %p2587_p11, %p33_p12  ;;  %s161_s23 = scalar_lea.vmem [#allocation5], %s2560_s10 }
  0x17   : > { %s170_s24 = sshll.u32 %s161_s23, 4  ;;  %s168_s25 = sshll.u32 %s167_s21, 4  ;;  %s171_s24 = int_to_ptr.vmem [resolvable:$true] %s170_s24  ;;  %s169_s25 = int_to_ptr.hbm [resolvable:$true] %s168_s25 }
  0x18   : > { %s2702_s27 = sshra.s32 %s169_s25, 4  ;;  %p2706_p2 = pneg %p2875_p13  ;;  %s2703_s27 = int_to_ptr.hbm [resolvable:$true] %s2702_s27 }
  0x19   : > { %s2704_s28 = scalar_lea.hbm %s2703_s27, 1536  ;;  %s2709_s4 = scalar_lea.hbm %s3647_s0, 3072 }
  0x1a   : > { %p2705_p0 = scmp.ne.s32.totalorder %s2703_s27, %s2704_s28  ;;  %p2710_p7 = scmp.lt.s32.totalorder %s2703_s27, %s3647_s0 }
  0x1b   : > { %p2711_p8 = scmp.lt.s32.totalorder %s2709_s4, %s2704_s28 }
  0x1c   : > { %p2707_p3 = pnand %p2706_p2, %p2705_p0 }
  0x1d   : > { %p2712_p9 = por %p2711_p8, %p2710_p7 }
  0x1e   : > { %p2708_p6 = pneg %p2707_p3 }
  0x20   : > { %p2713_p10 = pnand %p2712_p9, %p2708_p6 }
  0x22   : > { %2716 = shalt.err (!%p2713_p10)
}
  0x23   : > { %s2776_s8 = smov 128   ;;  %s2777_s10 = smov 8  }
  0x24   : > { %2584 = dma.hbm_to_vmem [thread:$0]  (!%p2875_p13), %s169_s25, 24576, %s171_s24, %s158_s26, %s2776_s8, %s2776_s8, %s2777_s10  }
  0x25   : > { %182 = sbr.rel (%p2849_p5) target bundleno = 886 (0x376), region = 32  ;;  %s184_s11 = sand.u32 (!%p2849_p5), 1, %s2762_s13  }
  0x26   : > { %s2562_s19 = smul.u32 (!%p2849_p5), 1536, %s184_s11  ;;  %s185_s20 = scalar_lea.sflag (!%p2849_p5), [#allocation6], %s184_s11 }
  0x28   : > { %s2895_s21 = scalar_lea.vmem (!%p2849_p5), [#allocation5], %s2562_s19 }
  0x2a   : > { %2749 = dma.done.wait (%p2842_p4), %s185_s20, 24576  }
  0x2b   : > { %2751 = vsyncadd (%p2842_p4), %s185_s20, 4294942720 }
  0x2c   : > { %2753 = dma.done.wait (%p2834_p1), [#allocation8], 896  }
  0x2d   : > { %2755 = vsyncadd (%p2834_p1), [#allocation8], 4294966400  ;;  %v2532_v0 = vld [vmem:[#allocation9 + $0x18] sm:$0xff]  ;;  %v2531_v1 = vld [vmem:[#allocation9 + $0x10] sm:$0xff]  ;;  %vm810_vm0 = vcmask 523264   ;;  %vm1140_vm1 = vcmask 355328  }
  0x2e   : > { %v232_v2 = vld [vmem:[%s2895_s21] sm:$0xff]  ;;  %v233_v3 = vld [vmem:[%s2895_s21 + $0x8] sm:$0xff]  ;;  %911 = vmatpush.bf16.msra.mxu0 %v2532_v0  ;;  %2548 = vmatpush.bf16.msra.mxu1 %v2532_v0  ;;  %v254_v15 = vld [vmem:[%s2895_s21 + $0x1b0] sm:$0xff]  ;;  %s2778_s17 = smov 88   ;;  %s2779_s18 = smov 48   ;;  %vm1261_vm2 = vcmask 716128  }
  0x2f   : > { %v296_v4 = vmul.f32 0.007103981, %v232_v2  ;;  %v297_v5 = vmul.f32 0.007103981, %v233_v3  ;;  %v2240_v6 = vld [vmem:[%s2895_s21 + $0x40] sm:$0xff]  ;;  %v2241_v7 = vld [vmem:[%s2895_s21 + $0x48] sm:$0xff]  ;;  %2549 = vmatpush.bf16.msra.mxu2 %v2532_v0  ;;  %2550 = vmatpush.bf16.msra.mxu3 %v2532_v0 }
  0x30   : > { %v425_v8 = vmul.f32 0.013951277, %v2240_v6  ;;  %v426_v9 = vmul.f32 0.013951277, %v2241_v7  ;;  %v2304_v10 = vld [vmem:[%s2895_s21 + $0x80] sm:$0xff]  ;;  %v2305_v11 = vld [vmem:[%s2895_s21 + $0x88] sm:$0xff] }
  0x31   : > { %v2530_v12 = vld [vmem:[#allocation9 + $0x8] sm:$0xff]  ;;  %v618_v13 = vmul.f32 0.0027094474, %v2304_v10  ;;  %v619_v14 = vmul.f32 0.0027094474, %v2305_v11  ;;  %v255_v16 = vld [vmem:[%s2895_s21 + $0x1b8] sm:$0xff] }
  0x32   : > { %v489_v17 = vadd.f32 %v425_v8, %v296_v4  ;;  %v490_v18 = vadd.f32 %v426_v9, %v297_v5  ;;  %v318_v19 = vmul.f32 0.007103981, %v254_v15  ;;  %v319_v20 = vmul.f32 0.007103981, %v255_v16  ;;  %v2262_v21 = vld [vmem:[%s2895_s21 + $0x1f0] sm:$0xff]  ;;  %v2263_v22 = vld [vmem:[%s2895_s21 + $0x1f8] sm:$0xff]  ;;  %912 = vmatpush.bf16.msra.mxu0 %v2531_v1  ;;  %2551 = vmatpush.bf16.msra.mxu1 %v2531_v1 }
  0x33   : > { %v447_v23 = vmul.f32 0.013951277, %v2262_v21  ;;  %v448_v24 = vmul.f32 0.013951277, %v2263_v22  ;;  %v2326_v25 = vld [vmem:[%s2895_s21 + $0x230] sm:$0xff]  ;;  %v2327_v26 = vld [vmem:[%s2895_s21 + $0x238] sm:$0xff]  ;;  %2552 = vmatpush.bf16.msra.mxu2 %v2531_v1  ;;  %2553 = vmatpush.bf16.msra.mxu3 %v2531_v1 }
  0x34   : > { %v2917_v27 = vadd.f32 %v618_v13, %v489_v17  ;;  %v2919_v28 = vadd.f32 %v619_v14, %v490_v18  ;;  %v640_v29 = vmul.f32 0.0027094474, %v2326_v25  ;;  %v641_v30 = vmul.f32 0.0027094474, %v2327_v26  ;;  %v270_v31 = vld [vmem:[%s2895_s21 + $0x330] sm:$0xff]  ;;  %v271_v32 = vld [vmem:[%s2895_s21 + $0x338] sm:$0xff] }
  0x35   : > { %v2529_v33 = vld [vmem:[#allocation9] sm:$0xff]  ;;  %v511_v34 = vadd.f32 %v447_v23, %v318_v19  ;;  %v512_v35 = vadd.f32 %v448_v24, %v319_v20  ;;  %v334_v36 = vmul.f32 0.007103981, %v270_v31  ;;  %v335_v37 = vmul.f32 0.007103981, %v271_v32  ;;  %v2278_v38 = vld [vmem:[%s2895_s21 + $0x370] sm:$0xff] }
  0x36   : > { %v2279_v39 = vld [vmem:[%s2895_s21 + $0x378] sm:$0xff]  ;;  %v463_v40 = vmul.f32 0.013951277, %v2278_v38  ;;  %v2342_v42 = vld [vmem:[%s2895_s21 + $0x3b0] sm:$0xff]  ;;  %913 = vmatpush.bf16.msra.mxu0 %v2530_v12  ;;  %2554 = vmatpush.bf16.msra.mxu1 %v2530_v12  ;;  %v746_v56 = vpack.c.bf16 %v2919_v28, %v2917_v27  ;;  %v256_v19 = vld [vmem:[%s2895_s21 + $0x240] sm:$0xff]  ;;  %s2780_s22 = smov 8  }
  0x37   : > { %v464_v41 = vmul.f32 0.013951277, %v2279_v39  ;;  %v2343_v43 = vld [vmem:[%s2895_s21 + $0x3b8] sm:$0xff]  ;;  %v704_v44 = vadd.f32 %v640_v29, %v511_v34  ;;  %v705_v45 = vadd.f32 %v641_v30, %v512_v35  ;;  %v656_v46 = vmul.f32 0.0027094474, %v2342_v42  ;;  %v286_v48 = vld [vmem:[%s2895_s21 + $0x4b0] sm:$0xff]  ;;  %2555 = vmatpush.bf16.msra.mxu2 %v2530_v12  ;;  %2556 = vmatpush.bf16.msra.mxu3 %v2530_v12 }
  0x38   : > { %v657_v47 = vmul.f32 0.0027094474, %v2343_v43  ;;  %v287_v49 = vld [vmem:[%s2895_s21 + $0x4b8] sm:$0xff]  ;;  %v527_v50 = vadd.f32 %v463_v40, %v334_v36  ;;  %v350_v52 = vmul.f32 0.007103981, %v286_v48  ;;  %v2294_v54 = vld [vmem:[%s2895_s21 + $0x4f0] sm:$0xff] }
  0x39   : > { %v528_v51 = vadd.f32 %v464_v41, %v335_v37  ;;  %v351_v53 = vmul.f32 0.007103981, %v287_v49  ;;  %v2295_v55 = vld [vmem:[%s2895_s21 + $0x4f8] sm:$0xff]  ;;  %v757_v57 = vpack.c.bf16 %v705_v45, %v704_v44  ;;  %v479_v58 = vmul.f32 0.013951277, %v2294_v54  ;;  %v2358_v60 = vld [vmem:[%s2895_s21 + $0x530] sm:$0xff] }
  0x3a   : > { %v480_v59 = vmul.f32 0.013951277, %v2295_v55  ;;  %v2359_v61 = vld [vmem:[%s2895_s21 + $0x538] sm:$0xff]  ;;  %v720_v62 = vadd.f32 %v656_v46, %v527_v50  ;;  %v672_v0 = vmul.f32 0.0027094474, %v2358_v60  ;;  %v234_v2 = vld [vmem:[%s2895_s21 + $0x10] sm:$0xff]  ;;  %914 = vmatpush.bf16.msra.mxu0 %v2529_v33  ;;  %2557 = vmatpush.bf16.msra.mxu1 %v2529_v33 }
  0x3b   : > { %v721_v63 = vadd.f32 %v657_v47, %v528_v51  ;;  %v673_v1 = vmul.f32 0.0027094474, %v2359_v61  ;;  %v235_v3 = vld [vmem:[%s2895_s21 + $0x18] sm:$0xff]  ;;  %v543_v4 = vadd.f32 %v479_v58, %v350_v52  ;;  %v298_v6 = vmul.f32 0.007103981, %v234_v2  ;;  %v2242_v8 = vld [vmem:[%s2895_s21 + $0x50] sm:$0xff]  ;;  %2558 = vmatpush.bf16.msra.mxu2 %v2529_v33  ;;  %2559 = vmatpush.bf16.msra.mxu3 %v2529_v33 }
  0x3c   : > { %v544_v5 = vadd.f32 %v480_v59, %v351_v53  ;;  %v299_v7 = vmul.f32 0.007103981, %v235_v3  ;;  %v2243_v9 = vld [vmem:[%s2895_s21 + $0x58] sm:$0xff]  ;;  %v427_v11 = vmul.f32 0.013951277, %v2242_v8  ;;  %v2306_v13 = vld [vmem:[%s2895_s21 + $0x90] sm:$0xff] }
  0x3d   : > { %v765_v10 = vpack.c.bf16 %v721_v63, %v720_v62  ;;  %v428_v12 = vmul.f32 0.013951277, %v2243_v9  ;;  %v2307_v14 = vld [vmem:[%s2895_s21 + $0x98] sm:$0xff]  ;;  %v736_v15 = vadd.f32 %v672_v0, %v543_v4  ;;  %v620_v17 = vmul.f32 0.0027094474, %v2306_v13  ;;  %v257_v20 = vld [vmem:[%s2895_s21 + $0x248] sm:$0xff]  ;;  %2384 = vmatmul.msk.bf16.vlgmr.msra.gmra.mxu0 %vm810_vm0, %v746_v56  ;;  %2395 = vmatmul.msk.bf16.vlgmr.msra.gmra.mxu1 %vm810_vm0, %v757_v57 }
  0x3e   : > { %v737_v16 = vadd.f32 %v673_v1, %v544_v5  ;;  %v621_v18 = vmul.f32 0.0027094474, %v2307_v14  ;;  %v320_v21 = vmul.f32 0.007103981, %v256_v19  ;;  %v321_v22 = vmul.f32 0.007103981, %v257_v20 }
  0x3f   : > { %v2264_v23 = vld [vmem:[%s2895_s21 + $0x280] sm:$0xff]  ;;  %v2265_v24 = vld [vmem:[%s2895_s21 + $0x288] sm:$0xff]  ;;  %2403 = vmatmul.msk.bf16.vlgmr.msra.gmra.mxu2 %vm810_vm0, %v765_v10  ;;  %v491_v34 = vadd.f32 %v427_v11, %v298_v6  ;;  %v492_v35 = vadd.f32 %v428_v12, %v299_v7  ;;  %s2781_s12 = smov 92   ;;  %s2782_s23 = smov 4   ;;  %vm1327_vm3 = vcmask 1044160   ;;  %vm1328_vm4 = vcmask 31748  }
  0x40   : > { %v773_v25 = vpack.c.bf16 %v737_v16, %v736_v15  ;;  %v449_v26 = vmul.f32 0.013951277, %v2264_v23  ;;  %v450_v27 = vmul.f32 0.013951277, %v2265_v24  ;;  %v2328_v28 = vld [vmem:[%s2895_s21 + $0x2c0] sm:$0xff]  ;;  %v2329_v29 = vld [vmem:[%s2895_s21 + $0x2c8] sm:$0xff]  ;;  %vm3321_vm5 = vmor %vm1328_vm4, %vm1327_vm3 }
  0x41   : > { %v642_v30 = vmul.f32 0.0027094474, %v2328_v28  ;;  %v643_v31 = vmul.f32 0.0027094474, %v2329_v29  ;;  %v272_v32 = vld [vmem:[%s2895_s21 + $0x3c0] sm:$0xff]  ;;  %v273_v33 = vld [vmem:[%s2895_s21 + $0x3c8] sm:$0xff]  ;;  %v684_v56 = vadd.f32 %v620_v17, %v491_v34  ;;  %v685_v57 = vadd.f32 %v621_v18, %v492_v35 }
  0x42   : > { %2411 = vmatmul.msk.bf16.vlgmr.msra.gmra.mxu3 %vm810_vm0, %v773_v25  ;;  %v336_v36 = vmul.f32 0.007103981, %v272_v32  ;;  %v337_v37 = vmul.f32 0.007103981, %v273_v33  ;;  %v2280_v38 = vld [vmem:[%s2895_s21 + $0x400] sm:$0xff]  ;;  %v2281_v39 = vld [vmem:[%s2895_s21 + $0x408] sm:$0xff]  ;;  %v513_v40 = vadd.f32 %v449_v26, %v320_v21  ;;  %v514_v41 = vadd.f32 %v450_v27, %v321_v22 }
  0x43   : > { %v465_v42 = vmul.f32 0.013951277, %v2280_v38  ;;  %v466_v43 = vmul.f32 0.013951277, %v2281_v39  ;;  %v2344_v44 = vld [vmem:[%s2895_s21 + $0x440] sm:$0xff]  ;;  %v2345_v45 = vld [vmem:[%s2895_s21 + $0x448] sm:$0xff]  ;;  %v747_v18 = vpack.c.bf16 %v685_v57, %v684_v56 }
  0x44   : > { %v658_v46 = vmul.f32 0.0027094474, %v2344_v44  ;;  %v659_v47 = vmul.f32 0.0027094474, %v2345_v45  ;;  %v288_v48 = vld [vmem:[%s2895_s21 + $0x540] sm:$0xff]  ;;  %v289_v49 = vld [vmem:[%s2895_s21 + $0x548] sm:$0xff]  ;;  %v706_v62 = vadd.f32 %v642_v30, %v513_v40  ;;  %v707_v63 = vadd.f32 %v643_v31, %v514_v41 }
  0x45   : > { %v529_v50 = vadd.f32 %v465_v42, %v336_v36  ;;  %v530_v51 = vadd.f32 %v466_v43, %v337_v37  ;;  %v352_v52 = vmul.f32 0.007103981, %v288_v48  ;;  %v353_v53 = vmul.f32 0.007103981, %v289_v49  ;;  %v2296_v54 = vld [vmem:[%s2895_s21 + $0x580] sm:$0xff]  ;;  %v2297_v55 = vld [vmem:[%s2895_s21 + $0x588] sm:$0xff] }
  0x46   : > { %v481_v58 = vmul.f32 0.013951277, %v2296_v54  ;;  %v482_v59 = vmul.f32 0.013951277, %v2297_v55  ;;  %v2360_v60 = vld [vmem:[%s2895_s21 + $0x5c0] sm:$0xff]  ;;  %v2361_v61 = vld [vmem:[%s2895_s21 + $0x5c8] sm:$0xff]  ;;  %v758_v19 = vpack.c.bf16 %v707_v63, %v706_v62 }
  0x47   : > { %v674_v0 = vmul.f32 0.0027094474, %v2360_v60  ;;  %v675_v1 = vmul.f32 0.0027094474, %v2361_v61  ;;  %v236_v2 = vld [vmem:[%s2895_s21 + $0x20] sm:$0xff]  ;;  %v237_v3 = vld [vmem:[%s2895_s21 + $0x28] sm:$0xff]  ;;  %v722_v4 = vadd.f32 %v658_v46, %v529_v50  ;;  %v723_v5 = vadd.f32 %v659_v47, %v530_v51 }
  0x48   : > { %v545_v6 = vadd.f32 %v481_v58, %v352_v52  ;;  %v546_v7 = vadd.f32 %v482_v59, %v353_v53  ;;  %v2244_v8 = vld [vmem:[%s2895_s21 + $0x60] sm:$0xff]  ;;  %v2245_v9 = vld [vmem:[%s2895_s21 + $0x68] sm:$0xff]  ;;  %v300_v14 = vmul.f32 0.007103981, %v236_v2  ;;  %v301_v15 = vmul.f32 0.007103981, %v237_v3 }
  0x49   : > { %v2308_v10 = vld [vmem:[%s2895_s21 + $0xa0] sm:$0xff]  ;;  %v2309_v11 = vld [vmem:[%s2895_s21 + $0xa8] sm:$0xff]  ;;  %v258_v16 = vld [vmem:[%s2895_s21 + $0x250] sm:$0xff]  ;;  %v429_v20 = vmul.f32 0.013951277, %v2244_v8  ;;  %v766_v24 = vpack.c.bf16 %v723_v5, %v722_v4  ;;  %s2783_s24 = smov 52  }
  0x4a   : > { %v738_v12 = vadd.f32 %v674_v0, %v545_v6  ;;  %v739_v13 = vadd.f32 %v675_v1, %v546_v7  ;;  %v259_v17 = vld [vmem:[%s2895_s21 + $0x258] sm:$0xff]  ;;  %v430_v21 = vmul.f32 0.013951277, %v2245_v9  ;;  %v2266_v22 = vld [vmem:[%s2895_s21 + $0x290] sm:$0xff]  ;;  %v622_v25 = vmul.f32 0.0027094474, %v2308_v10 }
  0x4b   : > { %v2267_v23 = vld [vmem:[%s2895_s21 + $0x298] sm:$0xff]  ;;  %v623_v26 = vmul.f32 0.0027094474, %v2309_v11  ;;  %v322_v27 = vmul.f32 0.007103981, %v258_v16  ;;  %v274_v30 = vld [vmem:[%s2895_s21 + $0x3d0] sm:$0xff]  ;;  %v493_v45 = vadd.f32 %v429_v20, %v300_v14 }
  0x4c   : > { %v323_v28 = vmul.f32 0.007103981, %v259_v17  ;;  %v451_v29 = vmul.f32 0.013951277, %v2266_v22  ;;  %v275_v31 = vld [vmem:[%s2895_s21 + $0x3d8] sm:$0xff]  ;;  %v774_v32 = vpack.c.bf16 %v739_v13, %v738_v12  ;;  %v2330_v34 = vld [vmem:[%s2895_s21 + $0x2d0] sm:$0xff]  ;;  %v494_v50 = vadd.f32 %v430_v21, %v301_v15 }
  0x4d   : > { %v452_v33 = vmul.f32 0.013951277, %v2267_v23  ;;  %v2331_v35 = vld [vmem:[%s2895_s21 + $0x2d8] sm:$0xff]  ;;  %v2282_v36 = vld [vmem:[%s2895_s21 + $0x410] sm:$0xff]  ;;  %2385 = vmatmul.msk.bf16.gmra.mxu0 %vm810_vm0, %v747_v18  ;;  %2396 = vmatmul.msk.bf16.gmra.mxu1 %vm810_vm0, %v758_v19  ;;  %v338_v38 = vmul.f32 0.007103981, %v274_v30  ;;  %v686_v5 = vadd.f32 %v622_v25, %v493_v45 }
  0x4e   : > { %v2283_v37 = vld [vmem:[%s2895_s21 + $0x418] sm:$0xff]  ;;  %v339_v39 = vmul.f32 0.007103981, %v275_v31  ;;  %v467_v40 = vmul.f32 0.013951277, %v2282_v36  ;;  %v2346_v42 = vld [vmem:[%s2895_s21 + $0x450] sm:$0xff]  ;;  %v515_v54 = vadd.f32 %v451_v29, %v322_v27  ;;  %v687_v6 = vadd.f32 %v623_v26, %v494_v50 }
  0x4f   : > { %2404 = vmatmul.msk.bf16.gmra.mxu2 %vm810_vm0, %v766_v24  ;;  %v468_v41 = vmul.f32 0.013951277, %v2283_v37  ;;  %v290_v43 = vld [vmem:[%s2895_s21 + $0x550] sm:$0xff]  ;;  %v291_v44 = vld [vmem:[%s2895_s21 + $0x558] sm:$0xff]  ;;  %v516_v55 = vadd.f32 %v452_v33, %v323_v28  ;;  %v644_v56 = vmul.f32 0.0027094474, %v2330_v34 }
  0x50   : > { %v2347_v46 = vld [vmem:[%s2895_s21 + $0x458] sm:$0xff]  ;;  %v354_v47 = vmul.f32 0.007103981, %v290_v43  ;;  %v2298_v48 = vld [vmem:[%s2895_s21 + $0x590] sm:$0xff]  ;;  %v355_v51 = vmul.f32 0.007103981, %v291_v44  ;;  %v531_v60 = vadd.f32 %v467_v40, %v338_v38  ;;  %v748_v23 = vpack.c.bf16 %v687_v6, %v686_v5 }
  0x51   : > { %v2299_v49 = vld [vmem:[%s2895_s21 + $0x598] sm:$0xff]  ;;  %v483_v52 = vmul.f32 0.013951277, %v2298_v48  ;;  %v645_v57 = vmul.f32 0.0027094474, %v2331_v35  ;;  %v2362_v58 = vld [vmem:[%s2895_s21 + $0x5d0] sm:$0xff]  ;;  %v532_v61 = vadd.f32 %v468_v41, %v339_v39  ;;  %v708_v7 = vadd.f32 %v644_v56, %v515_v54 }
  0x52   : > { %2412 = vmatmul.msk.bf16.gmra.mxu3 %vm810_vm0, %v774_v32  ;;  %v484_v53 = vmul.f32 0.013951277, %v2299_v49  ;;  %v2363_v59 = vld [vmem:[%s2895_s21 + $0x5d8] sm:$0xff]  ;;  %v660_v62 = vmul.f32 0.0027094474, %v2346_v42  ;;  %v238_v4 = vld [vmem:[%s2895_s21 + $0x30] sm:$0xff] }
  0x53   : > { %v661_v63 = vmul.f32 0.0027094474, %v2347_v46  ;;  %v547_v0 = vadd.f32 %v483_v52, %v354_v47  ;;  %v676_v2 = vmul.f32 0.0027094474, %v2362_v58  ;;  %v677_v3 = vmul.f32 0.0027094474, %v2363_v59 }
  0x54   : > { %v548_v1 = vadd.f32 %v484_v53, %v355_v51  ;;  %v709_v8 = vadd.f32 %v645_v57, %v516_v55  ;;  %v239_v9 = vld [vmem:[%s2895_s21 + $0x38] sm:$0xff]  ;;  %v2246_v10 = vld [vmem:[%s2895_s21 + $0x70] sm:$0xff]  ;;  %v724_v11 = vadd.f32 %v660_v62, %v531_v60  ;;  %v302_v15 = vmul.f32 0.007103981, %v238_v4  ;;  %v260_v16 = vld [vmem:[%s2895_s21 + $0x260] sm:$0xff]  ;;  %s2784_s25 = smov 44  }
  0x55   : > { %v725_v12 = vadd.f32 %v661_v63, %v532_v61  ;;  %v2247_v13 = vld [vmem:[%s2895_s21 + $0x78] sm:$0xff]  ;;  %v2310_v14 = vld [vmem:[%s2895_s21 + $0xb0] sm:$0xff]  ;;  %v261_v17 = vld [vmem:[%s2895_s21 + $0x268] sm:$0xff]  ;;  %v740_v18 = vadd.f32 %v676_v2, %v547_v0  ;;  %v303_v20 = vmul.f32 0.007103981, %v239_v9  ;;  %vm1310_vm6 = vcmask 719872  }
  0x56   : > { %v741_v19 = vadd.f32 %v677_v3, %v548_v1  ;;  %v431_v21 = vmul.f32 0.013951277, %v2246_v10  ;;  %v2268_v22 = vld [vmem:[%s2895_s21 + $0x2a0] sm:$0xff]  ;;  %v759_v24 = vpack.c.bf16 %v709_v8, %v708_v7  ;;  %v432_v25 = vmul.f32 0.013951277, %v2247_v13  ;;  %v2269_v27 = vld [vmem:[%s2895_s21 + $0x2a8] sm:$0xff] }
  0x57   : > { %v624_v26 = vmul.f32 0.0027094474, %v2310_v14  ;;  %v767_v28 = vpack.c.bf16 %v725_v12, %v724_v11  ;;  %v2311_v29 = vld [vmem:[%s2895_s21 + $0xb8] sm:$0xff]  ;;  %v324_v30 = vmul.f32 0.007103981, %v260_v16  ;;  %v276_v32 = vld [vmem:[%s2895_s21 + $0x3e0] sm:$0xff] }
  0x58   : > { %v325_v31 = vmul.f32 0.007103981, %v261_v17  ;;  %v453_v33 = vmul.f32 0.013951277, %v2268_v22  ;;  %v277_v34 = vld [vmem:[%s2895_s21 + $0x3e8] sm:$0xff]  ;;  %v2284_v35 = vld [vmem:[%s2895_s21 + $0x420] sm:$0xff]  ;;  %v775_v37 = vpack.c.bf16 %v741_v19, %v740_v18  ;;  %v495_v49 = vadd.f32 %v431_v21, %v302_v15 }
  0x59   : > { %v2285_v36 = vld [vmem:[%s2895_s21 + $0x428] sm:$0xff]  ;;  %v454_v38 = vmul.f32 0.013951277, %v2269_v27  ;;  %v2332_v39 = vld [vmem:[%s2895_s21 + $0x2e0] sm:$0xff]  ;;  %v340_v42 = vmul.f32 0.007103981, %v276_v32  ;;  %v496_v54 = vadd.f32 %v432_v25, %v303_v20 }
  0x5a   : > { %v2333_v40 = vld [vmem:[%s2895_s21 + $0x2e8] sm:$0xff]  ;;  %v292_v41 = vld [vmem:[%s2895_s21 + $0x560] sm:$0xff]  ;;  %v341_v46 = vmul.f32 0.007103981, %v277_v34  ;;  %v469_v47 = vmul.f32 0.013951277, %v2284_v35  ;;  %v517_v58 = vadd.f32 %v453_v33, %v324_v30  ;;  %v688_v9 = vadd.f32 %v624_v26, %v495_v49 }
  0x5b   : > { %v293_v43 = vld [vmem:[%s2895_s21 + $0x568] sm:$0xff]  ;;  %v2300_v44 = vld [vmem:[%s2895_s21 + $0x5a0] sm:$0xff]  ;;  %v470_v48 = vmul.f32 0.013951277, %v2285_v36  ;;  %v625_v50 = vmul.f32 0.0027094474, %v2311_v29  ;;  %v518_v59 = vadd.f32 %v454_v38, %v325_v31 }
  0x5c   : > { %v2301_v45 = vld [vmem:[%s2895_s21 + $0x5a8] sm:$0xff]  ;;  %v2348_v51 = vld [vmem:[%s2895_s21 + $0x460] sm:$0xff]  ;;  %v356_v53 = vmul.f32 0.007103981, %v292_v41  ;;  %v357_v55 = vmul.f32 0.007103981, %v293_v43  ;;  %v533_v0 = vadd.f32 %v469_v47, %v340_v42 }
  0x5d   : > { %2386 = vmatmul.msk.bf16.gmra.mxu0 %vm810_vm0, %v748_v23  ;;  %2397 = vmatmul.msk.bf16.gmra.mxu1 %vm810_vm0, %v759_v24  ;;  %v2349_v52 = vld [vmem:[%s2895_s21 + $0x468] sm:$0xff]  ;;  %v485_v56 = vmul.f32 0.013951277, %v2300_v44  ;;  %v486_v57 = vmul.f32 0.013951277, %v2301_v45  ;;  %v2364_v62 = vld [vmem:[%s2895_s21 + $0x5e0] sm:$0xff]  ;;  %v534_v1 = vadd.f32 %v470_v48, %v341_v46  ;;  %v689_v10 = vadd.f32 %v625_v50, %v496_v54 }
  0x5e   : > { %v646_v60 = vmul.f32 0.0027094474, %v2332_v39  ;;  %v647_v61 = vmul.f32 0.0027094474, %v2333_v40  ;;  %v2365_v63 = vld [vmem:[%s2895_s21 + $0x5e8] sm:$0xff]  ;;  %v240_v8 = vld [vmem:[%s2895_s21 + $0xc0] sm:$0xff] }
  0x5f   : > { %2405 = vmatmul.msk.bf16.gmra.mxu2 %vm810_vm0, %v767_v28  ;;  %v662_v2 = vmul.f32 0.0027094474, %v2348_v51  ;;  %v663_v3 = vmul.f32 0.0027094474, %v2349_v52  ;;  %v549_v4 = vadd.f32 %v485_v56, %v356_v53  ;;  %v550_v5 = vadd.f32 %v486_v57, %v357_v55  ;;  %v241_v13 = vld [vmem:[%s2895_s21 + $0xc8] sm:$0xff]  ;;  %v2248_v14 = vld [vmem:[%s2895_s21 + $0x100] sm:$0xff] }
  0x60   : > { %v678_v6 = vmul.f32 0.0027094474, %v2364_v62  ;;  %v679_v7 = vmul.f32 0.0027094474, %v2365_v63  ;;  %v710_v11 = vadd.f32 %v646_v60, %v517_v58  ;;  %v711_v12 = vadd.f32 %v647_v61, %v518_v59  ;;  %v2249_v17 = vld [vmem:[%s2895_s21 + $0x108] sm:$0xff]  ;;  %v2312_v18 = vld [vmem:[%s2895_s21 + $0x140] sm:$0xff] }
  0x61   : > { %v726_v15 = vadd.f32 %v662_v2, %v533_v0  ;;  %v727_v16 = vadd.f32 %v663_v3, %v534_v1  ;;  %v304_v19 = vmul.f32 0.007103981, %v240_v8  ;;  %v278_v20 = vld [vmem:[%s2895_s21 + $0x3f0] sm:$0xff]  ;;  %v305_v23 = vmul.f32 0.007103981, %v241_v13  ;;  %v279_v25 = vld [vmem:[%s2895_s21 + $0x3f8] sm:$0xff] }
  0x62   : > { %2413 = vmatmul.msk.bf16.gmra.mxu3 %vm810_vm0, %v775_v37  ;;  %v742_v21 = vadd.f32 %v678_v6, %v549_v4  ;;  %v743_v22 = vadd.f32 %v679_v7, %v550_v5  ;;  %v433_v24 = vmul.f32 0.013951277, %v2248_v14  ;;  %v749_v26 = vpack.c.bf16 %v689_v10, %v688_v9  ;;  %v262_v30 = vld [vmem:[%s2895_s21 + $0x270] sm:$0xff]  ;;  %v2313_v32 = vld [vmem:[%s2895_s21 + $0x148] sm:$0xff]  ;;  %v263_v34 = vld [vmem:[%s2895_s21 + $0x278] sm:$0xff]  ;;  %s2238_s26 = sshll.u32 %s2226_s16, 3 }
  0x63   : > { %v760_v27 = vpack.c.bf16 %v711_v12, %v710_v11  ;;  %v434_v28 = vmul.f32 0.013951277, %v2249_v17  ;;  %v626_v29 = vmul.f32 0.0027094474, %v2312_v18  ;;  %v768_v31 = vpack.c.bf16 %v727_v16, %v726_v15  ;;  %v2270_v35 = vld [vmem:[%s2895_s21 + $0x2b0] sm:$0xff]  ;;  %v2271_v36 = vld [vmem:[%s2895_s21 + $0x2b8] sm:$0xff] }
  0x64   : > { %v342_v33 = vmul.f32 0.007103981, %v278_v20  ;;  %v343_v37 = vmul.f32 0.007103981, %v279_v25  ;;  %v2286_v38 = vld [vmem:[%s2895_s21 + $0x430] sm:$0xff]  ;;  %v2287_v39 = vld [vmem:[%s2895_s21 + $0x438] sm:$0xff]  ;;  %v776_v41 = vpack.c.bf16 %v743_v22, %v742_v21  ;;  %v497_v53 = vadd.f32 %v433_v24, %v304_v19 }
  0x65   : > { %v294_v40 = vld [vmem:[%s2895_s21 + $0x570] sm:$0xff]  ;;  %v295_v42 = vld [vmem:[%s2895_s21 + $0x578] sm:$0xff]  ;;  %v326_v45 = vmul.f32 0.007103981, %v262_v30  ;;  %v327_v46 = vmul.f32 0.007103981, %v263_v34  ;;  %v498_v58 = vadd.f32 %v434_v28, %v305_v23 }
  0x66   : > { %v2302_v43 = vld [vmem:[%s2895_s21 + $0x5b0] sm:$0xff]  ;;  %v2303_v44 = vld [vmem:[%s2895_s21 + $0x5b8] sm:$0xff]  ;;  %v455_v47 = vmul.f32 0.013951277, %v2270_v35  ;;  %v456_v48 = vmul.f32 0.013951277, %v2271_v36  ;;  %v690_v12 = vadd.f32 %v626_v29, %v497_v53 }
  0x67   : > { %v471_v49 = vmul.f32 0.013951277, %v2286_v38  ;;  %v472_v50 = vmul.f32 0.013951277, %v2287_v39  ;;  %v2334_v51 = vld [vmem:[%s2895_s21 + $0x2f0] sm:$0xff]  ;;  %v2335_v52 = vld [vmem:[%s2895_s21 + $0x2f8] sm:$0xff] }
  0x68   : > { %v627_v54 = vmul.f32 0.0027094474, %v2313_v32  ;;  %v2350_v55 = vld [vmem:[%s2895_s21 + $0x470] sm:$0xff]  ;;  %v2351_v56 = vld [vmem:[%s2895_s21 + $0x478] sm:$0xff]  ;;  %v358_v57 = vmul.f32 0.007103981, %v294_v40  ;;  %v519_v0 = vadd.f32 %v455_v47, %v326_v45  ;;  %v520_v1 = vadd.f32 %v456_v48, %v327_v46 }
  0x69   : > { %v359_v59 = vmul.f32 0.007103981, %v295_v42  ;;  %v487_v60 = vmul.f32 0.013951277, %v2302_v43  ;;  %v488_v61 = vmul.f32 0.013951277, %v2303_v44  ;;  %v535_v4 = vadd.f32 %v471_v49, %v342_v33 }
  0x6a   : > { %v2366_v62 = vld [vmem:[%s2895_s21 + $0x5f0] sm:$0xff]  ;;  %v2367_v63 = vld [vmem:[%s2895_s21 + $0x5f8] sm:$0xff]  ;;  %v648_v2 = vmul.f32 0.0027094474, %v2334_v51  ;;  %v649_v3 = vmul.f32 0.0027094474, %v2335_v52  ;;  %v536_v5 = vadd.f32 %v472_v50, %v343_v37  ;;  %v691_v13 = vadd.f32 %v627_v54, %v498_v58 }
  0x6b   : > { %v664_v6 = vmul.f32 0.0027094474, %v2350_v55  ;;  %v665_v7 = vmul.f32 0.0027094474, %v2351_v56  ;;  %v551_v8 = vadd.f32 %v487_v60, %v358_v57  ;;  %v552_v9 = vadd.f32 %v488_v61, %v359_v59  ;;  %v242_v16 = vld [vmem:[%s2895_s21 + $0xd0] sm:$0xff]  ;;  %v243_v19 = vld [vmem:[%s2895_s21 + $0xd8] sm:$0xff] }
  0x6c   : > { %v680_v10 = vmul.f32 0.0027094474, %v2366_v62  ;;  %v681_v11 = vmul.f32 0.0027094474, %v2367_v63  ;;  %v712_v14 = vadd.f32 %v648_v2, %v519_v0  ;;  %v713_v15 = vadd.f32 %v649_v3, %v520_v1  ;;  %v2250_v20 = vld [vmem:[%s2895_s21 + $0x110] sm:$0xff]  ;;  %v2251_v24 = vld [vmem:[%s2895_s21 + $0x118] sm:$0xff] }
  0x6d   : > { %2387 = vmatmul.msk.bf16.gmra.mxu0 %vm810_vm0, %v749_v26  ;;  %2398 = vmatmul.msk.bf16.gmra.mxu1 %vm810_vm0, %v760_v27  ;;  %v728_v17 = vadd.f32 %v664_v6, %v535_v4  ;;  %v729_v18 = vadd.f32 %v665_v7, %v536_v5  ;;  %v306_v23 = vmul.f32 0.007103981, %v242_v16  ;;  %v750_v25 = vpack.c.bf16 %v691_v13, %v690_v12  ;;  %v280_v28 = vld [vmem:[%s2895_s21 + $0x480] sm:$0xff]  ;;  %v281_v29 = vld [vmem:[%s2895_s21 + $0x488] sm:$0xff]  ;;  %v2314_v37 = vld [vmem:[%s2895_s21 + $0x150] sm:$0xff]  ;;  %p225_p1 = scmp.lt.s32.totalorder %s2238_s26, 15 }
  0x6e   : > { %v744_v21 = vadd.f32 %v680_v10, %v551_v8  ;;  %v745_v22 = vadd.f32 %v681_v11, %v552_v9  ;;  %v761_v26 = vpack.c.bf16 %v713_v15, %v712_v14  ;;  %v307_v27 = vmul.f32 0.007103981, %v243_v19  ;;  %v264_v30 = vld [vmem:[%s2895_s21 + $0x300] sm:$0xff]  ;;  %v265_v33 = vld [vmem:[%s2895_s21 + $0x308] sm:$0xff]  ;;  %v2315_v38 = vld [vmem:[%s2895_s21 + $0x158] sm:$0xff]  ;;  %s2785_s4 = smov 84  }
  0x6f   : > { %2406 = vmatmul.msk.bf16.gmra.mxu2 %vm810_vm0, %v768_v31  ;;  %v769_v31 = vpack.c.bf16 %v729_v18, %v728_v17  ;;  %v435_v32 = vmul.f32 0.013951277, %v2250_v20  ;;  %v2272_v34 = vld [vmem:[%s2895_s21 + $0x340] sm:$0xff]  ;;  %v2273_v35 = vld [vmem:[%s2895_s21 + $0x348] sm:$0xff]  ;;  %v436_v36 = vmul.f32 0.013951277, %v2251_v24 }
  0x70   : > { %v2288_v39 = vld [vmem:[%s2895_s21 + $0x4c0] sm:$0xff]  ;;  %v2289_v40 = vld [vmem:[%s2895_s21 + $0x4c8] sm:$0xff]  ;;  %v344_v42 = vmul.f32 0.007103981, %v280_v28  ;;  %v345_v43 = vmul.f32 0.007103981, %v281_v29 }
  0x71   : > { %v328_v44 = vmul.f32 0.007103981, %v264_v30  ;;  %v329_v45 = vmul.f32 0.007103981, %v265_v33  ;;  %v457_v46 = vmul.f32 0.013951277, %v2272_v34  ;;  %v499_v54 = vadd.f32 %v435_v32, %v306_v23 }
  0x72   : > { %2414 = vmatmul.msk.bf16.gmra.mxu3 %vm810_vm0, %v776_v41  ;;  %v777_v41 = vpack.c.bf16 %v745_v22, %v744_v21  ;;  %v458_v47 = vmul.f32 0.013951277, %v2273_v35  ;;  %v473_v48 = vmul.f32 0.013951277, %v2288_v39  ;;  %v474_v49 = vmul.f32 0.013951277, %v2289_v40 }
  0x73   : > { %v2336_v50 = vld [vmem:[%s2895_s21 + $0x380] sm:$0xff]  ;;  %v2337_v51 = vld [vmem:[%s2895_s21 + $0x388] sm:$0xff]  ;;  %v500_v55 = vadd.f32 %v436_v36, %v307_v27  ;;  %v628_v56 = vmul.f32 0.0027094474, %v2314_v37  ;;  %v629_v57 = vmul.f32 0.0027094474, %v2315_v38  ;;  %v521_v58 = vadd.f32 %v457_v46, %v328_v44 }
  0x74   : > { %v2352_v52 = vld [vmem:[%s2895_s21 + $0x500] sm:$0xff]  ;;  %v2353_v53 = vld [vmem:[%s2895_s21 + $0x508] sm:$0xff]  ;;  %v522_v59 = vadd.f32 %v458_v47, %v329_v45  ;;  %v650_v60 = vmul.f32 0.0027094474, %v2336_v50  ;;  %v651_v61 = vmul.f32 0.0027094474, %v2337_v51  ;;  %v537_v62 = vadd.f32 %v473_v48, %v344_v42 }
  0x75   : > { %v538_v63 = vadd.f32 %v474_v49, %v345_v43  ;;  %v666_v0 = vmul.f32 0.0027094474, %v2352_v52  ;;  %v667_v1 = vmul.f32 0.0027094474, %v2353_v53  ;;  %v692_v2 = vadd.f32 %v628_v56, %v499_v54  ;;  %v244_v6 = vld [vmem:[%s2895_s21 + $0xe0] sm:$0xff]  ;;  %v245_v9 = vld [vmem:[%s2895_s21 + $0xe8] sm:$0xff] }
  0x76   : > { %v693_v3 = vadd.f32 %v629_v57, %v500_v55  ;;  %v714_v4 = vadd.f32 %v650_v60, %v521_v58  ;;  %v715_v5 = vadd.f32 %v651_v61, %v522_v59  ;;  %v2252_v10 = vld [vmem:[%s2895_s21 + $0x120] sm:$0xff]  ;;  %v308_v11 = vmul.f32 0.007103981, %v244_v6  ;;  %v2253_v12 = vld [vmem:[%s2895_s21 + $0x128] sm:$0xff]  ;;  %v282_v16 = vld [vmem:[%s2895_s21 + $0x490] sm:$0xff]  ;;  %s3664_s26 = smov (!%p225_p1, %s2238_s26), 15 }
  0x77   : > { %v730_v7 = vadd.f32 %v666_v0, %v537_v62  ;;  %v731_v8 = vadd.f32 %v667_v1, %v538_v63  ;;  %v309_v15 = vmul.f32 0.007103981, %v245_v9  ;;  %v283_v17 = vld [vmem:[%s2895_s21 + $0x498] sm:$0xff]  ;;  %v266_v18 = vld [vmem:[%s2895_s21 + $0x310] sm:$0xff]  ;;  %v437_v20 = vmul.f32 0.013951277, %v2252_v10 }
  0x78   : > { %v751_v13 = vpack.c.bf16 %v693_v3, %v692_v2  ;;  %v762_v14 = vpack.c.bf16 %v715_v5, %v714_v4  ;;  %v267_v21 = vld [vmem:[%s2895_s21 + $0x318] sm:$0xff]  ;;  %v2274_v22 = vld [vmem:[%s2895_s21 + $0x350] sm:$0xff]  ;;  %v438_v24 = vmul.f32 0.013951277, %v2253_v12  ;;  %v346_v29 = vmul.f32 0.007103981, %v282_v16 }
  0x79   : > { %v770_v19 = vpack.c.bf16 %v731_v8, %v730_v7  ;;  %v2275_v23 = vld [vmem:[%s2895_s21 + $0x358] sm:$0xff]  ;;  %v2290_v27 = vld [vmem:[%s2895_s21 + $0x4d0] sm:$0xff]  ;;  %v347_v30 = vmul.f32 0.007103981, %v283_v17  ;;  %v331_v32 = vmul.f32 0.007103981, %v267_v21 }
  0x7a   : > { %v2291_v28 = vld [vmem:[%s2895_s21 + $0x4d8] sm:$0xff]  ;;  %v459_v33 = vmul.f32 0.013951277, %v2274_v22  ;;  %v460_v34 = vmul.f32 0.013951277, %v2275_v23  ;;  %v2338_v37 = vld [vmem:[%s2895_s21 + $0x390] sm:$0xff]  ;;  %v502_v42 = vadd.f32 %v438_v24, %v309_v15 }
  0x7b   : > { %v475_v35 = vmul.f32 0.013951277, %v2290_v27  ;;  %v476_v36 = vmul.f32 0.013951277, %v2291_v28  ;;  %v2339_v38 = vld [vmem:[%s2895_s21 + $0x398] sm:$0xff]  ;;  %v2354_v39 = vld [vmem:[%s2895_s21 + $0x510] sm:$0xff] }
  0x7c   : > { %v2355_v40 = vld [vmem:[%s2895_s21 + $0x518] sm:$0xff]  ;;  %v524_v46 = vadd.f32 %v460_v34, %v331_v32  ;;  %v652_v47 = vmul.f32 0.0027094474, %v2338_v37  ;;  %v653_v48 = vmul.f32 0.0027094474, %v2339_v38  ;;  %v246_v59 = vld [vmem:[%s2895_s21 + $0xf0] sm:$0xff] }
  0x7d   : > { %2388 = vmatmul.msk.bf16.gmra.mxu0 %vm810_vm0, %v750_v25  ;;  %2399 = vmatmul.msk.bf16.gmra.mxu1 %vm810_vm0, %v761_v26  ;;  %v2316_v25 = vld [vmem:[%s2895_s21 + $0x160] sm:$0xff]  ;;  %v2317_v26 = vld [vmem:[%s2895_s21 + $0x168] sm:$0xff]  ;;  %v539_v49 = vadd.f32 %v475_v35, %v346_v29  ;;  %v540_v50 = vadd.f32 %v476_v36, %v347_v30  ;;  %v668_v51 = vmul.f32 0.0027094474, %v2354_v39  ;;  %v669_v52 = vmul.f32 0.0027094474, %v2355_v40 }
  0x7e   : > { %v630_v43 = vmul.f32 0.0027094474, %v2316_v25  ;;  %v631_v44 = vmul.f32 0.0027094474, %v2317_v26  ;;  %v717_v56 = vadd.f32 %v653_v48, %v524_v46  ;;  %v247_v60 = vld [vmem:[%s2895_s21 + $0xf8] sm:$0xff]  ;;  %v2254_v61 = vld [vmem:[%s2895_s21 + $0x130] sm:$0xff] }
  0x7f   : > { %2407 = vmatmul.msk.bf16.gmra.mxu2 %vm810_vm0, %v769_v31  ;;  %v330_v31 = vmul.f32 0.007103981, %v266_v18  ;;  %v732_v57 = vadd.f32 %v668_v51, %v539_v49  ;;  %v733_v58 = vadd.f32 %v669_v52, %v540_v50  ;;  %v2255_v62 = vld [vmem:[%s2895_s21 + $0x138] sm:$0xff]  ;;  %v310_v1 = vmul.f32 0.007103981, %v246_v59  ;;  %v284_v2 = vld [vmem:[%s2895_s21 + $0x4a0] sm:$0xff] }
  0x80   : > { %v695_v54 = vadd.f32 %v631_v44, %v502_v42  ;;  %v285_v3 = vld [vmem:[%s2895_s21 + $0x4a8] sm:$0xff]  ;;  %v268_v4 = vld [vmem:[%s2895_s21 + $0x320] sm:$0xff]  ;;  %v311_v6 = vmul.f32 0.007103981, %v247_v60  ;;  %v439_v7 = vmul.f32 0.013951277, %v2254_v61 }
  0x81   : > { %v523_v45 = vadd.f32 %v459_v33, %v330_v31  ;;  %v771_v5 = vpack.c.bf16 %v733_v58, %v732_v57  ;;  %v269_v8 = vld [vmem:[%s2895_s21 + $0x328] sm:$0xff]  ;;  %v2276_v9 = vld [vmem:[%s2895_s21 + $0x360] sm:$0xff]  ;;  %v440_v10 = vmul.f32 0.013951277, %v2255_v62  ;;  %v2319_v12 = vld [vmem:[%s2895_s21 + $0x178] sm:$0xff]  ;;  %vm1378_vm7 = vcmask 388128  }
  0x82   : > { %2415 = vmatmul.msk.bf16.gmra.mxu3 %vm810_vm0, %v777_v41  ;;  %v501_v41 = vadd.f32 %v437_v20, %v308_v11  ;;  %v2318_v11 = vld [vmem:[%s2895_s21 + $0x170] sm:$0xff]  ;;  %v2277_v15 = vld [vmem:[%s2895_s21 + $0x368] sm:$0xff]  ;;  %v348_v16 = vmul.f32 0.007103981, %v284_v2  ;;  %v349_v17 = vmul.f32 0.007103981, %v285_v3  ;;  %v503_v28 = vadd.f32 %v439_v7, %v310_v1 }
  0x83   : > { %v716_v55 = vadd.f32 %v652_v47, %v523_v45  ;;  %v332_v18 = vmul.f32 0.007103981, %v268_v4  ;;  %v461_v20 = vmul.f32 0.013951277, %v2276_v9  ;;  %v462_v21 = vmul.f32 0.013951277, %v2277_v15 }
  0x84   : > { %v694_v53 = vadd.f32 %v630_v43, %v501_v41  ;;  %v2340_v24 = vld [vmem:[%s2895_s21 + $0x3a0] sm:$0xff]  ;;  %v2341_v25 = vld [vmem:[%s2895_s21 + $0x3a8] sm:$0xff]  ;;  %v504_v29 = vadd.f32 %v440_v10, %v311_v6  ;;  %v632_v30 = vmul.f32 0.0027094474, %v2318_v11  ;;  %v633_v31 = vmul.f32 0.0027094474, %v2319_v12 }
  0x85   : > { %v763_v0 = vpack.c.bf16 %v717_v56, %v716_v55  ;;  %v2356_v26 = vld [vmem:[%s2895_s21 + $0x520] sm:$0xff]  ;;  %v2357_v27 = vld [vmem:[%s2895_s21 + $0x528] sm:$0xff]  ;;  %v525_v32 = vadd.f32 %v461_v20, %v332_v18  ;;  %v654_v34 = vmul.f32 0.0027094474, %v2340_v24  ;;  %v655_v35 = vmul.f32 0.0027094474, %v2341_v25 }
  0x86   : > { %v752_v63 = vpack.c.bf16 %v695_v54, %v694_v53  ;;  %v670_v38 = vmul.f32 0.0027094474, %v2356_v26  ;;  %v671_v39 = vmul.f32 0.0027094474, %v2357_v27  ;;  %v696_v40 = vadd.f32 %v632_v30, %v503_v28  ;;  %v248_v47 = vld [vmem:[%s2895_s21 + $0x180] sm:$0xff]  ;;  %v249_v50 = vld [vmem:[%s2895_s21 + $0x188] sm:$0xff] }
  0x87   : > { %v697_v41 = vadd.f32 %v633_v31, %v504_v29  ;;  %v718_v42 = vadd.f32 %v654_v34, %v525_v32  ;;  %v2256_v51 = vld [vmem:[%s2895_s21 + $0x1c0] sm:$0xff]  ;;  %v2257_v52 = vld [vmem:[%s2895_s21 + $0x1c8] sm:$0xff]  ;;  %v312_v53 = vmul.f32 0.007103981, %v248_v47  ;;  %v313_v54 = vmul.f32 0.007103981, %v249_v50 }
  0x88   : > { %v441_v55 = vmul.f32 0.013951277, %v2256_v51  ;;  %v442_v56 = vmul.f32 0.013951277, %v2257_v52  ;;  %v2320_v57 = vld [vmem:[%s2895_s21 + $0x200] sm:$0xff]  ;;  %v2321_v58 = vld [vmem:[%s2895_s21 + $0x208] sm:$0xff] }
  0x89   : > { %v753_v46 = vpack.c.bf16 %v697_v41, %v696_v40  ;;  %v634_v61 = vmul.f32 0.0027094474, %v2320_v57  ;;  %v635_v62 = vmul.f32 0.0027094474, %v2321_v58  ;;  %v250_v2 = vld [vmem:[%s2895_s21 + $0x190] sm:$0xff]  ;;  %v251_v3 = vld [vmem:[%s2895_s21 + $0x198] sm:$0xff] }
  0x8a   : > { %v505_v59 = vadd.f32 %v441_v55, %v312_v53  ;;  %v506_v60 = vadd.f32 %v442_v56, %v313_v54  ;;  %v2258_v6 = vld [vmem:[%s2895_s21 + $0x1d0] sm:$0xff]  ;;  %v2259_v7 = vld [vmem:[%s2895_s21 + $0x1d8] sm:$0xff]  ;;  %v314_v10 = vmul.f32 0.007103981, %v250_v2  ;;  %v315_v11 = vmul.f32 0.007103981, %v251_v3 }
  0x8b   : > { %v443_v12 = vmul.f32 0.013951277, %v2258_v6  ;;  %v2323_v15 = vld [vmem:[%s2895_s21 + $0x218] sm:$0xff]  ;;  %v252_v32 = vld [vmem:[%s2895_s21 + $0x1a0] sm:$0xff]  ;;  %v2325_v54 = vld [vmem:[%s2895_s21 + $0x228] sm:$0xff]  ;;  %vm1493_vm8 = vcmask 1044192  }
  0x8c   : > { %v637_v20 = vmul.f32 0.0027094474, %v2323_v15  ;;  %v2324_v53 = vld [vmem:[%s2895_s21 + $0x220] sm:$0xff]  ;;  %vm1494_vm9 = vcmask 64516   ;;  %vm1427_vm10 = vcmask 748928   ;;  %vm1476_vm12 = vcmask 752640  }
  0x8d   : > { %2389 = vmatmul.msk.bf16.gmra.mxu0 %vm810_vm0, %v751_v13  ;;  %2400 = vmatmul.msk.bf16.gmra.mxu1 %vm810_vm0, %v762_v14  ;;  %v2292_v13 = vld [vmem:[%s2895_s21 + $0x4e0] sm:$0xff]  ;;  %v2293_v14 = vld [vmem:[%s2895_s21 + $0x4e8] sm:$0xff]  ;;  %v638_v58 = vmul.f32 0.0027094474, %v2324_v53  ;;  %vm3336_vm11 = vmor %vm1494_vm9, %vm1493_vm8  ;;  %vm1544_vm13 = vcmask 420928   ;;  %vm1593_vm14 = vcmask 781728  }
  0x8e   : > { %v477_v22 = vmul.f32 0.013951277, %v2292_v13  ;;  %v478_v23 = vmul.f32 0.013951277, %v2293_v14  ;;  %v444_v13 = vmul.f32 0.013951277, %v2259_v7 }
  0x8f   : > { %2408 = vmatmul.msk.bf16.gmra.mxu2 %vm810_vm0, %v770_v19  ;;  %v333_v19 = vmul.f32 0.007103981, %v269_v8  ;;  %v2322_v14 = vld [vmem:[%s2895_s21 + $0x210] sm:$0xff]  ;;  %s2563_s27 = smul.u32 48, %s3664_s26  ;;  %vm1810_vm15 = vcmask 359424   ;;  %s2786_s15 = smov 40  }
  0x90   : > { %v541_v36 = vadd.f32 %v477_v22, %v348_v16  ;;  %v542_v37 = vadd.f32 %v478_v23, %v349_v17  ;;  %v507_v17 = vadd.f32 %v443_v12, %v314_v10  ;;  %v508_v18 = vadd.f32 %v444_v13, %v315_v11  ;;  %s2787_s16 = smov 124   ;;  %s2788_s6 = smov 36  }
  0x91   : > { %v526_v33 = vadd.f32 %v462_v21, %v333_v19  ;;  %v636_v19 = vmul.f32 0.0027094474, %v2322_v14  ;;  %s3465_s30 = scalar_lea.vmem %s3650_s3, %s2563_s27  ;;  %s2789_s7 = smov 80   ;;  %vm1902_vm3 = vcmask 326656   ;;  %vm2044_vm4 = vcmask 293888  }
  0x92   : > { %v734_v44 = vadd.f32 %v670_v38, %v541_v36  ;;  %v735_v45 = vadd.f32 %v671_v39, %v542_v37  ;;  %v701_v30 = vadd.f32 %v637_v20, %v508_v18  ;;  %v2260_v36 = vld [vmem:[%s2895_s21 + $0x1e0] sm:$0xff]  ;;  %v2261_v37 = vld [vmem:[%s2895_s21 + $0x1e8] sm:$0xff]  ;;  %s2790_s8 = smov 120   ;;  %s2791_s10 = smov 76  }
  0x93   : > { %v719_v43 = vadd.f32 %v655_v35, %v526_v33  ;;  %v700_v29 = vadd.f32 %v636_v19, %v507_v17  ;;  %v253_v33 = vld [vmem:[%s2895_s21 + $0x1a8] sm:$0xff] }
  0x94   : > { %v772_v49 = vpack.c.bf16 %v735_v45, %v734_v44  ;;  %v316_v45 = vmul.f32 0.007103981, %v252_v32 }
  0x95   : > { %v764_v48 = vpack.c.bf16 %v719_v43, %v718_v42  ;;  %v755_v35 = vpack.c.bf16 %v701_v30, %v700_v29 }
  0x9d   : > { %2390 = vmatmul.msk.bf16.gmra.mxu0 %vm810_vm0, %v752_v63  ;;  %2401 = vmatmul.msk.bf16.gmra.mxu1 %vm810_vm0, %v763_v0  ;;  %v698_v63 = vadd.f32 %v634_v61, %v505_v59  ;;  %v699_v0 = vadd.f32 %v635_v62, %v506_v60  ;;  %v639_v59 = vmul.f32 0.0027094474, %v2325_v54 }
  0x9f   : > { %2409 = vmatmul.msk.bf16.gmra.mxu2 %vm810_vm0, %v771_v5  ;;  %v754_v1 = vpack.c.bf16 %v699_v0, %v698_v63 }
  0xad   : > { %2391 = vmatmul.msk.bf16.gmra.mxu0 %vm810_vm0, %v753_v46  ;;  %2402 = vmatmul.msk.bf16.gmra.mxu1 %vm810_vm0, %v764_v48  ;;  %v317_v46 = vmul.f32 0.007103981, %v253_v33  ;;  %v445_v48 = vmul.f32 0.013951277, %v2260_v36 }
  0xaf   : > { %2410 = vmatmul.msk.bf16.gmra.mxu2 %vm810_vm0, %v772_v49  ;;  %v446_v49 = vmul.f32 0.013951277, %v2261_v37  ;;  %v509_v56 = vadd.f32 %v445_v48, %v316_v45 }
  0xb1   : > { %v510_v57 = vadd.f32 %v446_v49, %v317_v46 }
  0xb3   : > { %v703_v6 = vadd.f32 %v639_v59, %v510_v57 }
  0xba   : > { %v916_v4 = vpop.f32.mrf.mxu0  ;;  %v971_v5 = vpop.f32.mrf.mxu1 }
  0xbb   : > { %v1076_v8 = vpack.c.bf16 %v916_v4, %v916_v4  ;;  %v1098_v9 = vpack.c.bf16 %v971_v5, %v971_v5  ;;  %v702_v5 = vadd.f32 %v638_v58, %v509_v56 }
  0xbd   : > { %1141 = vst.msk [vmem:[#allocation2] sm:$0xf] %vm1140_vm1, %v1076_v8  ;;  %2392 = vmatmul.msk.bf16.gmra.mxu0 %vm810_vm0, %v754_v1 }
  0xbe   : > { %1163 = vst.msk [vmem:[#allocation2 + $0x58] sm:$0xf] %vm1140_vm1, %v1098_v9  ;;  %v756_v9 = vpack.c.bf16 %v703_v6, %v702_v5 }
  0xc2   : > { %v1011_v16 = vpop.f32.mrf.mxu2  ;;  %v918_v22 = vpop.f32.mrf.mxu0 }
  0xc3   : > { %v1114_v21 = vpack.c.bf16 %v1011_v16, %v1011_v16  ;;  %v973_v23 = vpop.f32.mrf.mxu1  ;;  %v1077_v25 = vpack.c.bf16 %v918_v22, %v918_v22 }
  0xc4   : > { %v1099_v26 = vpack.c.bf16 %v973_v23, %v973_v23  ;;  %v1205_v31 = vld [vmem:[#allocation2] sm:$0xf] }
  0xc5   : > { %v1051_v24 = vpop.f32.mrf.mxu3  ;;  %1179 = vst.msk [vmem:[#allocation2 + $0x98] sm:$0xf] %vm1140_vm1, %v1114_v21  ;;  %v1276_v28 = vld [vmem:[#allocation2 + $0x58] sm:$0xf] }
  0xc6   : > { %v1130_v27 = vpack.c.bf16 %v1051_v24, %v1051_v24  ;;  %1142 = vst.msk [vmem:[#allocation2 + $0x4] sm:$0xf] %vm1140_vm1, %v1077_v25  ;;  %1298 = vrot.lane.b32.xlu0 %v1276_v28, %s2778_s17 }
  0xc7   : > { %1164 = vst.msk [vmem:[#allocation2 + $0x5c] sm:$0xf] %vm1140_vm1, %v1099_v26 }
  0xc8   : > { %1195 = vst.msk [vmem:[#allocation2 + $0xd8] sm:$0xf] %vm1140_vm1, %v1130_v27 }
  0xc9   : > { %1213 = vst.msk [vmem:[#allocation3] sm:$0xf] %vm1140_vm1, %v1205_v31 }
  0xca   : > { %v1013_v34 = vpop.f32.mrf.mxu2  ;;  %v921_v39 = vpop.f32.mrf.mxu0 }
  0xcb   : > { %v1115_v38 = vpack.c.bf16 %v1013_v34, %v1013_v34  ;;  %v976_v40 = vpop.f32.mrf.mxu1  ;;  %v1078_v42 = vpack.c.bf16 %v921_v39, %v921_v39 }
  0xcc   : > { %v1100_v43 = vpack.c.bf16 %v976_v40, %v976_v40  ;;  %v1393_v44 = vld [vmem:[#allocation2 + $0x98] sm:$0xf] }
  0xcd   : > { %v1053_v41 = vpop.f32.mrf.mxu3  ;;  %1180 = vst.msk [vmem:[#allocation2 + $0x9c] sm:$0xf] %vm1140_vm1, %v1115_v38  ;;  %1415 = vrot.lane.b32.xlu2 %v1393_v44, %s2779_s18  ;;  %2393 = vmatmul.msk.bf16.gmra.mxu0 %vm810_vm0, %v755_v35  ;;  %v1206_v51 = vld [vmem:[#allocation2 + $0x4] sm:$0xf] }
  0xce   : > { %v1131_v47 = vpack.c.bf16 %v1053_v41, %v1053_v41  ;;  %1143 = vst.msk [vmem:[#allocation2 + $0x8] sm:$0xf] %vm1140_vm1, %v1078_v42  ;;  %v1277_v52 = vld [vmem:[#allocation2 + $0x5c] sm:$0xf] }
  0xcf   : > { %v1510_v50 = vld [vmem:[#allocation2 + $0xd8] sm:$0xf]  ;;  %1165 = vst.msk [vmem:[#allocation2 + $0x60] sm:$0xf] %vm1140_vm1, %v1100_v43  ;;  %1300 = vrot.lane.b32.xlu1 %v1277_v52, %s2778_s17 }
  0xd0   : > { %1196 = vst.msk [vmem:[#allocation2 + $0xdc] sm:$0xf] %vm1140_vm1, %v1131_v47  ;;  %1532 = vrot.lane.b32.xlu0 %v1510_v50, %s2780_s22 }
  0xd1   : > { %1214 = vst.msk [vmem:[#allocation3 + $0xc] sm:$0xf] %vm1140_vm1, %v1206_v51 }
  0xd2   : > { %v1016_v55 = vpop.f32.mrf.mxu2  ;;  %v923_v61 = vpop.f32.mrf.mxu0 }
  0xd3   : > { %v1116_v60 = vpack.c.bf16 %v1016_v55, %v1016_v55  ;;  %v978_v62 = vpop.f32.mrf.mxu1  ;;  %v1079_v0 = vpack.c.bf16 %v923_v61, %v923_v61 }
  0xd4   : > { %v1101_v1 = vpack.c.bf16 %v978_v62, %v978_v62  ;;  %v1394_v2 = vld [vmem:[#allocation2 + $0x9c] sm:$0xf] }
  0xd5   : > { %v1056_v63 = vpop.f32.mrf.mxu3  ;;  %1181 = vst.msk [vmem:[#allocation2 + $0xa0] sm:$0xf] %vm1140_vm1, %v1116_v60  ;;  %v1207_v7 = vld [vmem:[#allocation2 + $0x8] sm:$0xf] }
  0xd6   : > { %v1132_v3 = vpack.c.bf16 %v1056_v63, %v1056_v63  ;;  %1144 = vst.msk [vmem:[#allocation2 + $0xc] sm:$0xf] %vm1140_vm1, %v1079_v0  ;;  %v1338_v18 = vld [vmem:[#allocation2 + $0x60] sm:$0xf] }
  0xd7   : > { %v1511_v4 = vld [vmem:[#allocation2 + $0xdc] sm:$0xf]  ;;  %1166 = vst.msk [vmem:[#allocation2 + $0x64] sm:$0xf] %vm1140_vm1, %v1101_v1 }
  0xd8   : > { %1197 = vst.msk [vmem:[#allocation2 + $0xe0] sm:$0xf] %vm1140_vm1, %v1132_v3  ;;  %1417 = vrot.lane.b32.xlu0 %v1394_v2, %s2779_s18  ;;  %1534 = vrot.lane.b32.xlu1 %v1511_v4, %s2780_s22 }
  0xd9   : > { %1215 = vst.msk [vmem:[#allocation3 + $0x18] sm:$0xf] %vm1140_vm1, %v1207_v7 }
  0xda   : > { %v1018_v8 = vpop.f32.mrf.mxu2  ;;  %v926_v11 = vpop.f32.mrf.mxu0 }
  0xdb   : > { %v1117_v10 = vpack.c.bf16 %v1018_v8, %v1018_v8  ;;  %v981_v12 = vpop.f32.mrf.mxu1  ;;  %v1080_v14 = vpack.c.bf16 %v926_v11, %v926_v11 }
  0xdc   : > { %v1102_v15 = vpack.c.bf16 %v981_v12, %v981_v12  ;;  %v1436_v16 = vld [vmem:[#allocation2 + $0xa0] sm:$0xf] }
  0xdd   : > { %v1058_v13 = vpop.f32.mrf.mxu3  ;;  %1182 = vst.msk [vmem:[#allocation2 + $0xa4] sm:$0xf] %vm1140_vm1, %v1117_v10  ;;  %2394 = vmatmul.msk.bf16.gmra.mxu0 %vm810_vm0, %v756_v9  ;;  %v1208_v19 = vld [vmem:[#allocation2 + $0xc] sm:$0xf] }
  0xde   : > { %v1133_v17 = vpack.c.bf16 %v1058_v13, %v1058_v13  ;;  %1145 = vst.msk [vmem:[#allocation2 + $0x10] sm:$0xf] %vm1140_vm1, %v1080_v14  ;;  %v1339_v20 = vld [vmem:[#allocation2 + $0x64] sm:$0xf] }
  0xdf   : > { %1167 = vst.msk [vmem:[#allocation2 + $0x68] sm:$0xf] %vm1140_vm1, %v1102_v15  ;;  %1356 = vrot.lane.b32.xlu2 %v1339_v20, %s2782_s23 }
  0xe0   : > { %1198 = vst.msk [vmem:[#allocation2 + $0xe4] sm:$0xf] %vm1140_vm1, %v1133_v17  ;;  %1452 = vrot.lane.b32.xlu0 %v1436_v16, %s2781_s12  ;;  %1354 = vrot.lane.b32.xlu1 %v1338_v18, %s2782_s23 }
  0xe1   : > { %1216 = vst.msk [vmem:[#allocation3 + $0x24] sm:$0xf] %vm1140_vm1, %v1208_v19 }
  0xe2   : > { %v1021_v21 = vpop.f32.mrf.mxu2  ;;  %v928_v23 = vpop.f32.mrf.mxu0 }
  0xe3   : > { %v1118_v22 = vpack.c.bf16 %v1021_v21, %v1021_v21  ;;  %v983_v24 = vpop.f32.mrf.mxu1  ;;  %v1081_v26 = vpack.c.bf16 %v928_v23, %v928_v23 }
  0xe4   : > { %v1103_v27 = vpack.c.bf16 %v983_v24, %v983_v24  ;;  %v1437_v29 = vld [vmem:[#allocation2 + $0xa4] sm:$0xf] }
  0xe5   : > { %v1061_v25 = vpop.f32.mrf.mxu3  ;;  %1183 = vst.msk [vmem:[#allocation2 + $0xa8] sm:$0xf] %vm1140_vm1, %v1118_v22  ;;  %v1209_v30 = vld [vmem:[#allocation2 + $0x10] sm:$0xf] }
  0xe6   : > { %v1134_v28 = vpack.c.bf16 %v1061_v25, %v1061_v25  ;;  %1146 = vst.msk [vmem:[#allocation2 + $0x14] sm:$0xf] %vm1140_vm1, %v1081_v26  ;;  %v1340_v31 = vld [vmem:[#allocation2 + $0x68] sm:$0xf] }
  0xe7   : > { %1168 = vst.msk [vmem:[#allocation2 + $0x6c] sm:$0xf] %vm1140_vm1, %v1103_v27 }
  0xe8   : > { %1199 = vst.msk [vmem:[#allocation2 + $0xe8] sm:$0xf] %vm1140_vm1, %v1134_v28  ;;  %1454 = vrot.lane.b32.xlu1 %v1437_v29, %s2781_s12  ;;  %1358 = vrot.lane.b32.xlu0 %v1340_v31, %s2782_s23 }
  0xe9   : > { %1217 = vst.msk [vmem:[#allocation3 + $0x30] sm:$0xf] %vm1140_vm1, %v1209_v30 }
  0xea   : > { %v1023_v32 = vpop.f32.mrf.mxu2  ;;  %v931_v34 = vpop.f32.mrf.mxu0 }
  0xeb   : > { %v1119_v33 = vpack.c.bf16 %v1023_v32, %v1023_v32  ;;  %v986_v35 = vpop.f32.mrf.mxu1  ;;  %v1082_v37 = vpack.c.bf16 %v931_v34, %v931_v34 }
  0xec   : > { %v1104_v38 = vpack.c.bf16 %v986_v35, %v986_v35  ;;  %v1438_v39 = vld [vmem:[#allocation2 + $0xa8] sm:$0xf] }
  0xed   : > { %v1063_v36 = vpop.f32.mrf.mxu3  ;;  %1184 = vst.msk [vmem:[#allocation2 + $0xac] sm:$0xf] %vm1140_vm1, %v1119_v33  ;;  %1456 = vrot.lane.b32.xlu2 %v1438_v39, %s2781_s12  ;;  %v1210_v42 = vld [vmem:[#allocation2 + $0x14] sm:$0xf] }
  0xee   : > { %v1135_v40 = vpack.c.bf16 %v1063_v36, %v1063_v36  ;;  %1147 = vst.msk [vmem:[#allocation2 + $0x18] sm:$0xf] %vm1140_vm1, %v1082_v37  ;;  %v1341_v43 = vld [vmem:[#allocation2 + $0x6c] sm:$0xf] }
  0xef   : > { %v1555_v41 = vld [vmem:[#allocation2 + $0xe8] sm:$0xf]  ;;  %1169 = vst.msk [vmem:[#allocation2 + $0x70] sm:$0xf] %vm1140_vm1, %v1104_v38 }
  0xf0   : > { %1200 = vst.msk [vmem:[#allocation2 + $0xec] sm:$0xf] %vm1140_vm1, %v1135_v40  ;;  %1573 = vrot.lane.b32.xlu0 %v1555_v41, %s2783_s24  ;;  %1360 = vrot.lane.b32.xlu1 %v1341_v43, %s2782_s23 }
  0xf1   : > { %1218 = vst.msk [vmem:[#allocation3 + $0x3c] sm:$0xf] %vm1140_vm1, %v1210_v42 }
  0xf2   : > { %v1026_v44 = vpop.f32.mrf.mxu2  ;;  %v933_v46 = vpop.f32.mrf.mxu0 }
  0xf3   : > { %v1120_v45 = vpack.c.bf16 %v1026_v44, %v1026_v44  ;;  %v988_v47 = vpop.f32.mrf.mxu1  ;;  %v1083_v49 = vpack.c.bf16 %v933_v46, %v933_v46 }
  0xf4   : > { %v1105_v50 = vpack.c.bf16 %v988_v47, %v988_v47  ;;  %v1439_v52 = vld [vmem:[#allocation2 + $0xac] sm:$0xf] }
  0xf5   : > { %v1066_v48 = vpop.f32.mrf.mxu3  ;;  %1185 = vst.msk [vmem:[#allocation2 + $0xb0] sm:$0xf] %vm1140_vm1, %v1120_v45  ;;  %v1211_v54 = vld [vmem:[#allocation2 + $0x18] sm:$0xf] }
  0xf6   : > { %v1136_v51 = vpack.c.bf16 %v1066_v48, %v1066_v48  ;;  %1148 = vst.msk [vmem:[#allocation2 + $0x1c] sm:$0xf] %vm1140_vm1, %v1083_v49  ;;  %v1342_v55 = vld [vmem:[#allocation2 + $0x70] sm:$0xf] }
  0xf7   : > { %v1556_v53 = vld [vmem:[#allocation2 + $0xec] sm:$0xf]  ;;  %1170 = vst.msk [vmem:[#allocation2 + $0x74] sm:$0xf] %vm1140_vm1, %v1105_v50  ;;  %1362 = vrot.lane.b32.xlu2 %v1342_v55, %s2782_s23 }
  0xf8   : > { %1201 = vst.msk [vmem:[#allocation2 + $0xf0] sm:$0xf] %vm1140_vm1, %v1136_v51  ;;  %1458 = vrot.lane.b32.xlu0 %v1439_v52, %s2781_s12  ;;  %1575 = vrot.lane.b32.xlu1 %v1556_v53, %s2783_s24 }
  0xf9   : > { %1219 = vst.msk [vmem:[#allocation3 + $0x48] sm:$0xf] %vm1140_vm1, %v1211_v54 }
  0xfa   : > { %v1028_v56 = vpop.f32.mrf.mxu2  ;;  %v936_v58 = vpop.f32.mrf.mxu0 }
  0xfb   : > { %v1121_v57 = vpack.c.bf16 %v1028_v56, %v1028_v56  ;;  %v991_v59 = vpop.f32.mrf.mxu1  ;;  %v1084_v61 = vpack.c.bf16 %v936_v58, %v936_v58 }
  0xfc   : > { %v1106_v62 = vpack.c.bf16 %v991_v59, %v991_v59  ;;  %v1440_v0 = vld [vmem:[#allocation2 + $0xb0] sm:$0xf] }
  0xfd   : > { %v1068_v60 = vpop.f32.mrf.mxu3  ;;  %1186 = vst.msk [vmem:[#allocation2 + $0xb4] sm:$0xf] %vm1140_vm1, %v1121_v57  ;;  %v1212_v2 = vld [vmem:[#allocation2 + $0x1c] sm:$0xf] }
  0xfe   : > { %v1137_v63 = vpack.c.bf16 %v1068_v60, %v1068_v60  ;;  %1149 = vst.msk [vmem:[#allocation2 + $0x20] sm:$0xf] %vm1140_vm1, %v1084_v61  ;;  %v1343_v3 = vld [vmem:[#allocation2 + $0x74] sm:$0xf] }
  0xff   : > { %v1557_v1 = vld [vmem:[#allocation2 + $0xf0] sm:$0xf]  ;;  %1171 = vst.msk [vmem:[#allocation2 + $0x78] sm:$0xf] %vm1140_vm1, %v1106_v62 }
 0x100   : > { %1202 = vst.msk [vmem:[#allocation2 + $0xf4] sm:$0xf] %vm1140_vm1, %v1137_v63  ;;  %1460 = vrot.lane.b32.xlu1 %v1440_v0, %s2781_s12  ;;  %1364 = vrot.lane.b32.xlu0 %v1343_v3, %s2782_s23 }
 0x101   : > { %1577 = vrot.lane.b32.xlu2 %v1557_v1, %s2783_s24  ;;  %1220 = vst.msk [vmem:[#allocation3 + $0x54] sm:$0xf] %vm1140_vm1, %v1212_v2 }
 0x102   : > { %v1031_v4 = vpop.f32.mrf.mxu2  ;;  %v938_v6 = vpop.f32.mrf.mxu0 }
 0x103   : > { %v1122_v5 = vpack.c.bf16 %v1031_v4, %v1031_v4  ;;  %v993_v7 = vpop.f32.mrf.mxu1  ;;  %v1085_v9 = vpack.c.bf16 %v938_v6, %v938_v6 }
 0x104   : > { %v1107_v10 = vpack.c.bf16 %v993_v7, %v993_v7  ;;  %v1441_v12 = vld [vmem:[#allocation2 + $0xb4] sm:$0xf] }
 0x105   : > { %v1071_v8 = vpop.f32.mrf.mxu3  ;;  %1187 = vst.msk [vmem:[#allocation2 + $0xb8] sm:$0xf] %vm1140_vm1, %v1122_v5  ;;  %v1221_v24 = vld [vmem:[#allocation2 + $0x20] sm:$0xf] }
 0x106   : > { %v1138_v11 = vpack.c.bf16 %v1071_v8, %v1071_v8  ;;  %1150 = vst.msk [vmem:[#allocation2 + $0x24] sm:$0xf] %vm1140_vm1, %v1085_v9  ;;  %v1344_v32 = vld [vmem:[#allocation2 + $0x78] sm:$0xf] }
 0x107   : > { %v1558_v13 = vld [vmem:[#allocation2 + $0xf4] sm:$0xf]  ;;  %1172 = vst.msk [vmem:[#allocation2 + $0x7c] sm:$0xf] %vm1140_vm1, %v1107_v10 }
 0x108   : > { %1203 = vst.msk [vmem:[#allocation2 + $0xf8] sm:$0xf] %vm1140_vm1, %v1138_v11  ;;  %1579 = vrot.lane.b32.xlu0 %v1558_v13, %s2783_s24 }
 0x109   : > { %1462 = vrot.lane.b32.xlu2 %v1441_v12, %s2781_s12 }
 0x10a   : > { %v1033_v14 = vpop.f32.mrf.mxu2  ;;  %v941_v16 = vpop.f32.mrf.mxu0 }
 0x10b   : > { %v1123_v15 = vpack.c.bf16 %v1033_v14, %v1033_v14  ;;  %v996_v17 = vpop.f32.mrf.mxu1  ;;  %v1086_v18 = vpack.c.bf16 %v941_v16, %v941_v16 }
 0x10c   : > { %v1108_v20 = vpack.c.bf16 %v996_v17, %v996_v17  ;;  %v1442_v23 = vld [vmem:[#allocation2 + $0xb8] sm:$0xf] }
 0x10d   : > { %v1073_v19 = vpop.f32.mrf.mxu3  ;;  %1188 = vst.msk [vmem:[#allocation2 + $0xbc] sm:$0xf] %vm1140_vm1, %v1123_v15  ;;  %v1222_v41 = vld [vmem:[#allocation2 + $0x24] sm:$0xf] }
 0x10e   : > { %v1139_v21 = vpack.c.bf16 %v1073_v19, %v1073_v19  ;;  %1151 = vst.msk [vmem:[#allocation2 + $0x28] sm:$0xf] %vm1140_vm1, %v1086_v18  ;;  %v1345_v30 = vld [vmem:[#allocation2 + $0x7c] sm:$0xf] }
 0x10f   : > { %v1559_v22 = vld [vmem:[#allocation2 + $0xf8] sm:$0xf]  ;;  %1173 = vst.msk [vmem:[#allocation2 + $0x80] sm:$0xf] %vm1140_vm1, %v1108_v20 }
 0x110   : > { %1581 = vrot.lane.b32.xlu1 %v1559_v22, %s2783_s24  ;;  %1204 = vst.msk [vmem:[#allocation2 + $0xfc] sm:$0xf] %vm1140_vm1, %v1139_v21  ;;  %1237 = vrot.lane.b32.xlu0 %v1221_v24, %s2784_s25 }
 0x111   : > { %1464 = vrot.lane.b32.xlu2 %v1442_v23, %s2781_s12 }
 0x112   : > { %v1036_v25 = vpop.f32.mrf.mxu2  ;;  %v943_v27 = vpop.f32.mrf.mxu0 }
 0x113   : > { %v1124_v26 = vpack.c.bf16 %v1036_v25, %v1036_v25  ;;  %v998_v28 = vpop.f32.mrf.mxu1  ;;  %v1087_v29 = vpack.c.bf16 %v943_v27, %v943_v27 }
 0x114   : > { %v1109_v31 = vpack.c.bf16 %v998_v28, %v998_v28  ;;  %v1443_v50 = vld [vmem:[#allocation2 + $0xbc] sm:$0xf] }
 0x115   : > { %1189 = vst.msk [vmem:[#allocation2 + $0xc0] sm:$0xf] %vm1140_vm1, %v1124_v26  ;;  %v1223_v40 = vld [vmem:[#allocation2 + $0x28] sm:$0xf] }
 0x116   : > { %1152 = vst.msk [vmem:[#allocation2 + $0x2c] sm:$0xf] %vm1140_vm1, %v1087_v29 }
 0x117   : > { %v1560_v33 = vld [vmem:[#allocation2 + $0xfc] sm:$0xf]  ;;  %1174 = vst.msk [vmem:[#allocation2 + $0x84] sm:$0xf] %vm1140_vm1, %v1109_v31 }
 0x118   : > { %1368 = vrot.lane.b32.xlu1 %v1345_v30, %s2782_s23  ;;  %1366 = vrot.lane.b32.xlu0 %v1344_v32, %s2782_s23 }
 0x119   : > { %1583 = vrot.lane.b32.xlu2 %v1560_v33, %s2783_s24 }
 0x11a   : > { %v1038_v34 = vpop.f32.mrf.mxu2  ;;  %v946_v36 = vpop.f32.mrf.mxu0 }
 0x11b   : > { %v1125_v35 = vpack.c.bf16 %v1038_v34, %v1038_v34  ;;  %v1001_v37 = vpop.f32.mrf.mxu1  ;;  %v1088_v38 = vpack.c.bf16 %v946_v36, %v946_v36 }
 0x11c   : > { %v1110_v39 = vpack.c.bf16 %v1001_v37, %v1001_v37 }
 0x11d   : > { %1190 = vst.msk [vmem:[#allocation2 + $0xc4] sm:$0xf] %vm1140_vm1, %v1125_v35  ;;  %v1224_v49 = vld [vmem:[#allocation2 + $0x2c] sm:$0xf] }
 0x11e   : > { %1153 = vst.msk [vmem:[#allocation2 + $0x30] sm:$0xf] %vm1140_vm1, %v1088_v38  ;;  %v1388_v33 = vld [vmem:[#allocation2 + $0x84] sm:$0xf] }
 0x11f   : > { %1175 = vst.msk [vmem:[#allocation2 + $0x88] sm:$0xf] %vm1140_vm1, %v1110_v39 }
 0x120   : > { %1241 = vrot.lane.b32.xlu1 %v1223_v40, %s2784_s25  ;;  %1239 = vrot.lane.b32.xlu0 %v1222_v41, %s2784_s25  ;;  %v1553_v40 = vld [vmem:[#allocation2 + $0xe0] sm:$0xf] }
 0x122   : > { %v1041_v42 = vpop.f32.mrf.mxu2  ;;  %v948_v44 = vpop.f32.mrf.mxu0 }
 0x123   : > { %v1126_v43 = vpack.c.bf16 %v1041_v42, %v1041_v42  ;;  %v1003_v45 = vpop.f32.mrf.mxu1  ;;  %v1089_v46 = vpack.c.bf16 %v948_v44, %v948_v44 }
 0x124   : > { %v1111_v47 = vpack.c.bf16 %v1003_v45, %v1003_v45 }
 0x125   : > { %1191 = vst.msk [vmem:[#allocation2 + $0xc8] sm:$0xf] %vm1140_vm1, %v1126_v43  ;;  %v1225_v48 = vld [vmem:[#allocation2 + $0x30] sm:$0xf] }
 0x126   : > { %1154 = vst.msk [vmem:[#allocation2 + $0x34] sm:$0xf] %vm1140_vm1, %v1089_v46  ;;  %1245 = vrot.lane.b32.xlu2 %v1225_v48, %s2784_s25  ;;  %v1389_v57 = vld [vmem:[#allocation2 + $0x88] sm:$0xf] }
 0x127   : > { %1176 = vst.msk [vmem:[#allocation2 + $0x8c] sm:$0xf] %vm1140_vm1, %v1111_v47  ;;  %v3236_v3 = vpop.permute.xlu2 %1415 }
 0x128   : > { %1243 = vrot.lane.b32.xlu1 %v1224_v49, %s2784_s25  ;;  %1466 = vrot.lane.b32.xlu0 %v1443_v50, %s2781_s12  ;;  %v1504_v50 = vld [vmem:[#allocation2 + $0xc0] sm:$0xf] }
 0x12a   : > { %v1043_v51 = vpop.f32.mrf.mxu2  ;;  %v951_v53 = vpop.f32.mrf.mxu0 }
 0x12b   : > { %v1127_v52 = vpack.c.bf16 %v1043_v51, %v1043_v51  ;;  %v1006_v54 = vpop.f32.mrf.mxu1  ;;  %v1090_v55 = vpack.c.bf16 %v951_v53, %v951_v53 }
 0x12c   : > { %v1506_v56 = vld [vmem:[#allocation2 + $0xc8] sm:$0xf]  ;;  %v1112_v58 = vpack.c.bf16 %v1006_v54, %v1006_v54  ;;  %v1554_v54 = vld [vmem:[#allocation2 + $0xe4] sm:$0xf] }
 0x12d   : > { %1192 = vst.msk [vmem:[#allocation2 + $0xcc] sm:$0xf] %vm1140_vm1, %v1127_v52  ;;  %v1226_v2 = vld [vmem:[#allocation2 + $0x34] sm:$0xf] }
 0x12e   : > { %1155 = vst.msk [vmem:[#allocation2 + $0x38] sm:$0xf] %vm1140_vm1, %v1090_v55  ;;  %1524 = vrot.lane.b32.xlu2 %v1506_v56, %s2780_s22  ;;  %v1390_v8 = vld [vmem:[#allocation2 + $0x8c] sm:$0xf]  ;;  %v1387_v55 = vld [vmem:[#allocation2 + $0x80] sm:$0xf] }
 0x12f   : > { %1177 = vst.msk [vmem:[#allocation2 + $0x90] sm:$0xf] %vm1140_vm1, %v1112_v58 }
 0x130   : > { %1407 = vrot.lane.b32.xlu1 %v1389_v57, %s2779_s18 }
 0x132   : > { %v1046_v59 = vpop.f32.mrf.mxu2  ;;  %v953_v61 = vpop.f32.mrf.mxu0 }
 0x133   : > { %v1128_v60 = vpack.c.bf16 %v1046_v59, %v1046_v59  ;;  %v1008_v62 = vpop.f32.mrf.mxu1  ;;  %v1091_v63 = vpack.c.bf16 %v953_v61, %v953_v61  ;;  %v1505_v59 = vld [vmem:[#allocation2 + $0xc4] sm:$0xf] }
 0x134   : > { %v1507_v0 = vld [vmem:[#allocation2 + $0xcc] sm:$0xf]  ;;  %v1113_v1 = vpack.c.bf16 %v1008_v62, %v1008_v62 }
 0x135   : > { %1193 = vst.msk [vmem:[#allocation2 + $0xd0] sm:$0xf] %vm1140_vm1, %v1128_v60  ;;  %1526 = vrot.lane.b32.xlu0 %v1507_v0, %s2780_s22  ;;  %v1227_v11 = vld [vmem:[#allocation2 + $0x38] sm:$0xf] }
 0x136   : > { %1156 = vst.msk [vmem:[#allocation2 + $0x3c] sm:$0xf] %vm1140_vm1, %v1091_v63  ;;  %1247 = vrot.lane.b32.xlu2 %v1226_v2, %s2784_s25  ;;  %v1391_v15 = vld [vmem:[#allocation2 + $0x90] sm:$0xf] }
 0x137   : > { %1178 = vst.msk [vmem:[#allocation2 + $0x94] sm:$0xf] %vm1140_vm1, %v1113_v1 }
 0x138   : > { %v3239_v4 = vpop.permute.xlu0 %1298 }
 0x139   : > { %v3246_v12 = vpop.permute.xlu2 %1356 }
 0x13a   : > { %v1048_v5 = vpop.f32.mrf.mxu2  ;;  %v956_v7 = vpop.f32.mrf.mxu0 }
 0x13b   : > { %v1129_v6 = vpack.c.bf16 %v1048_v5, %v1048_v5  ;;  %v1092_v9 = vpack.c.bf16 %v956_v7, %v956_v7 }
 0x13c   : > { %v1508_v10 = vld [vmem:[#allocation2 + $0xd0] sm:$0xf] }
 0x13d   : > { %1194 = vst.msk [vmem:[#allocation2 + $0xd4] sm:$0xf] %vm1140_vm1, %v1129_v6  ;;  %1528 = vrot.lane.b32.xlu1 %v1508_v10, %s2780_s22  ;;  %1249 = vrot.lane.b32.xlu0 %v1227_v11, %s2784_s25  ;;  %v1228_v18 = vld [vmem:[#allocation2 + $0x3c] sm:$0xf] }
 0x13e   : > { %1157 = vst.msk [vmem:[#allocation2 + $0x40] sm:$0xf] %vm1140_vm1, %v1092_v9  ;;  %1409 = vrot.lane.b32.xlu2 %v1390_v8, %s2779_s18  ;;  %v1392_v23 = vld [vmem:[#allocation2 + $0x94] sm:$0xf] }
 0x141   : > { %v3250_v14 = vpop.permute.xlu1 %1300 }
 0x142   : > { %v3248_v13 = vpop.permute.xlu0 %1532  ;;  %v958_v16 = vpop.f32.mrf.mxu0 }
 0x143   : > { %v1093_v17 = vpack.c.bf16 %v958_v16, %v958_v16 }
 0x144   : > { %v1509_v19 = vld [vmem:[#allocation2 + $0xd4] sm:$0xf] }
 0x145   : > { %1251 = vrot.lane.b32.xlu1 %v1228_v18, %s2784_s25  ;;  %1411 = vrot.lane.b32.xlu0 %v1391_v15, %s2779_s18  ;;  %1158 = vst.msk [vmem:[#allocation2 + $0x44] sm:$0xf] %vm1140_vm1, %v1093_v17  ;;  %v1270_v26 = vld [vmem:[#allocation2 + $0x40] sm:$0xf] }
 0x146   : > { %1530 = vrot.lane.b32.xlu2 %v1509_v19, %s2780_s22 }
 0x147   : > { %v3258_v21 = vpop.permute.xlu2 %1456 }
 0x14a   : > { %v3256_v20 = vpop.permute.xlu0 %1417  ;;  %v3260_v22 = vpop.permute.xlu1 %1534 }
 0x14b   : > { %v961_v24 = vpop.f32.mrf.mxu0 }
 0x14c   : > { %v1094_v25 = vpack.c.bf16 %v961_v24, %v961_v24  ;;  %v1271_v27 = vld [vmem:[#allocation2 + $0x44] sm:$0xf] }
 0x14d   : > { %1413 = vrot.lane.b32.xlu1 %v1392_v23, %s2779_s18  ;;  %1288 = vrot.lane.b32.xlu0 %v1271_v27, %s2778_s17  ;;  %v1308_v23 = vrot.slane %v3239_v4, 4 }
 0x14e   : > { %1159 = vst.msk [vmem:[#allocation2 + $0x48] sm:$0xf] %vm1140_vm1, %v1094_v25  ;;  %1286 = vrot.lane.b32.xlu2 %v1270_v26, %s2778_s17 }
 0x14f   : > { %v1317_v27 = vsel %vm1310_vm6, %v1308_v23, %v3239_v4  ;;  %v1309_v4 = vrot.slane %v3250_v14, 4 }
 0x151   : > { %v3270_v30 = vpop.permute.xlu2 %1362 }
 0x152   : > { %v3266_v28 = vpop.permute.xlu0 %1452  ;;  %v3268_v29 = vpop.permute.xlu1 %1354 }
 0x153   : > { %v963_v31 = vpop.f32.mrf.mxu0 }
 0x154   : > { %v1095_v32 = vpack.c.bf16 %v963_v31, %v963_v31 }
 0x155   : > { %v1272_v34 = vld [vmem:[#allocation2 + $0x48] sm:$0xf]  ;;  %1405 = vrot.lane.b32.xlu0 %v1388_v33, %s2779_s18 }
 0x156   : > { %1160 = vst.msk [vmem:[#allocation2 + $0x4c] sm:$0xf] %vm1140_vm1, %v1095_v32  ;;  %1290 = vrot.lane.b32.xlu1 %v1272_v34, %s2778_s17 }
 0x15a   : > { %v3275_v35 = vpop.permute.xlu0 %1358  ;;  %v3277_v36 = vpop.permute.xlu1 %1454 }
 0x15b   : > { %v966_v37 = vpop.f32.mrf.mxu0  ;;  %v3279_v38 = vpop.permute.xlu2 %1577 }
 0x15c   : > { %v1096_v39 = vpack.c.bf16 %v966_v37, %v966_v37  ;;  %v1318_v37 = vsel %vm1310_vm6, %v1309_v4, %v3250_v14 }
 0x15d   : > { %v1273_v41 = vld [vmem:[#allocation2 + $0x4c] sm:$0xf]  ;;  %1569 = vrot.lane.b32.xlu0 %v1553_v40, %s2783_s24 }
 0x15e   : > { %1161 = vst.msk [vmem:[#allocation2 + $0x50] sm:$0xf] %vm1140_vm1, %v1096_v39  ;;  %1292 = vrot.lane.b32.xlu2 %v1273_v41, %s2778_s17 }
 0x162   : > { %v3284_v42 = vpop.permute.xlu0 %1573  ;;  %v3286_v43 = vpop.permute.xlu1 %1360 }
 0x163   : > { %v968_v44 = vpop.f32.mrf.mxu0  ;;  %v3288_v47 = vpop.permute.xlu2 %1462 }
 0x164   : > { %v1097_v45 = vpack.c.bf16 %v968_v44, %v968_v44 }
 0x165   : > { %v1274_v46 = vld [vmem:[#allocation2 + $0x50] sm:$0xf] }
 0x166   : > { %1162 = vst.msk [vmem:[#allocation2 + $0x54] sm:$0xf] %vm1140_vm1, %v1097_v45  ;;  %1294 = vrot.lane.b32.xlu1 %v1274_v46, %s2778_s17 }
 0x16a   : > { %v3292_v48 = vpop.permute.xlu0 %1458  ;;  %v3294_v49 = vpop.permute.xlu1 %1575 }
 0x16b   : > { %v1465_v52 = vpop.permute.xlu2 %1464  ;;  %v1471_v14 = vrot.slane %v3292_v48, 4 }
 0x16c   : > { %v1474_v24 = vrot.slane %v1465_v52, 4 }
 0x16d   : > { %v1275_v51 = vld [vmem:[#allocation2 + $0x54] sm:$0xf]  ;;  %v1480_v46 = vsel %vm1476_vm12, %v1471_v14, %v3292_v48  ;;  %v1469_v48 = vrot.slane %v3277_v36, 4 }
 0x16e   : > { %1520 = vrot.lane.b32.xlu1 %v1504_v50, %s2780_s22  ;;  %1296 = vrot.lane.b32.xlu2 %v1275_v51, %s2778_s17 }
 0x172   : > { %v3298_v53 = vpop.permute.xlu0 %1364  ;;  %v3304_v57 = vpop.permute.xlu1 %1460 }
 0x173   : > { %v3300_v56 = vpop.permute.xlu2 %1583 }
 0x176   : > { %1571 = vrot.lane.b32.xlu1 %v1554_v54, %s2783_s24  ;;  %1403 = vrot.lane.b32.xlu2 %v1387_v55, %s2779_s18 }
 0x17a   : > { %v3306_v58 = vpop.permute.xlu0 %1579 }
 0x17e   : > { %1522 = vrot.lane.b32.xlu2 %v1505_v59, %s2780_s22 }
 0x180   : > { %v1246_v60 = vpop.permute.xlu2 %1245 }
 0x181   : > { %1266 = vst.msk [vmem:[#allocation3 + $0x30] sm:$0xf] %vm1261_vm2, %v1246_v60 }
 0x182   : > { %v1582_v61 = vpop.permute.xlu1 %1581  ;;  %v1238_v62 = vpop.permute.xlu0 %1237 }
 0x183   : > { %1262 = vst.msk [vmem:[#allocation3] sm:$0xf] %vm1261_vm2, %v1238_v62  ;;  %v1478_v62 = vsel %vm1476_vm12, %v1469_v48, %v3277_v36 }
 0x188   : > { %v3311_v63 = vpop.permute.xlu2 %1524 }
 0x18a   : > { %v1369_v0 = vpop.permute.xlu1 %1368  ;;  %v1367_v1 = vpop.permute.xlu0 %1366 }
 0x190   : > { %v1248_v2 = vpop.permute.xlu2 %1247 }
 0x191   : > { %1267 = vst.msk [vmem:[#allocation3 + $0x3c] sm:$0xf] %vm1261_vm2, %v1248_v2 }
 0x192   : > { %v1242_v5 = vpop.permute.xlu1 %1241  ;;  %v1240_v6 = vpop.permute.xlu0 %1239 }
 0x193   : > { %1264 = vst.msk [vmem:[#allocation3 + $0x18] sm:$0xf] %vm1261_vm2, %v1242_v5 }
 0x194   : > { %1263 = vst.msk [vmem:[#allocation3 + $0xc] sm:$0xf] %vm1261_vm2, %v1240_v6  ;;  %v1473_v6 = vrot.slane %v3288_v47, 4 }
 0x198   : > { %v1410_v7 = vpop.permute.xlu2 %1409 }
 0x19a   : > { %v1244_v8 = vpop.permute.xlu1 %1243  ;;  %v1467_v9 = vpop.permute.xlu0 %1466 }
 0x19b   : > { %1265 = vst.msk [vmem:[#allocation3 + $0x24] sm:$0xf] %vm1261_vm2, %v1244_v8  ;;  %v1475_v32 = vrot.slane %v1467_v9, 4  ;;  %v1472_v8 = vrot.slane %v3304_v57, 4 }
 0x1a0   : > { %v3317_v10 = vpop.permute.xlu2 %1530 }
 0x1a2   : > { %v3319_v11 = vpop.permute.xlu1 %1407 }
 0x1a7   : > { %v1527_v15 = vpop.permute.xlu0 %1526 }
 0x1a8   : > { %v1287_v16 = vpop.permute.xlu2 %1286 }
 0x1a9   : > { %v1302_v18 = vrot.slane %v1287_v16, 4 }
 0x1ab   : > { %v1311_v19 = vsel %vm1310_vm6, %v1302_v18, %v1287_v16 }
 0x1ac   : > { %1330 = vst.msk [vmem:[#allocation3] sm:$0xff] %vm3321_vm5, %v1311_v19 }
 0x1ad   : > { %1379 = vst.msk [vmem:[#allocation3 + $0x4] sm:$0xf] %vm1378_vm7, %v3268_v29  ;;  %v1483_v29 = vsel %vm1476_vm12, %v1474_v24, %v1465_v52 }
 0x1af   : > { %v3331_v25 = vpop.permute.xlu1 %1528  ;;  %v1250_v26 = vpop.permute.xlu0 %1249 }
 0x1b0   : > { %1268 = vst.msk [vmem:[#allocation3 + $0x48] sm:$0xf] %vm1261_vm2, %v1250_v26 }
 0x1b1   : > { %1336 = vst.msk [vmem:[#allocation3 + $0x48] sm:$0xff] %vm3321_vm5, %v1317_v27 }
 0x1b2   : > { %1385 = vst.msk [vmem:[#allocation3 + $0x4c] sm:$0xf] %vm1378_vm7, %v1367_v1  ;;  %v1470_v1 = vrot.slane %v3258_v21, 4 }
 0x1b3   : > { %1434 = vst.msk [vmem:[#allocation3 + $0x4c] sm:$0xf] %vm1427_vm10, %v3236_v3 }
 0x1b4   : > { %1502 = vst.msk [vmem:[#allocation3 + $0x4c] sm:$0xff] %vm3336_vm11, %v1483_v29  ;;  %v1479_v36 = vsel %vm1476_vm12, %v1470_v1, %v3258_v21  ;;  %v1468_v21 = vrot.slane %v3266_v28, 4 }
 0x1b5   : > { %1551 = vst.msk [vmem:[#allocation3 + $0x50] sm:$0xf] %vm1544_vm13, %v3248_v13  ;;  %v1484_v13 = vsel %vm1476_vm12, %v1475_v32, %v1467_v9 }
 0x1b6   : > { %1600 = vst.msk [vmem:[#allocation3 + $0x50] sm:$0xf] %vm1593_vm14, %v1582_v61 }
 0x1b7   : > { %v1252_v33 = vpop.permute.xlu1 %1251  ;;  %v3352_v34 = vpop.permute.xlu0 %1411 }
 0x1b8   : > { %1269 = vst.msk [vmem:[#allocation3 + $0x54] sm:$0xf] %vm1261_vm2, %v1252_v33  ;;  %v1293_v3 = vpop.permute.xlu2 %1292  ;;  %v2466_v44 = vld [vmem:[#allocation3 + $0x48] sm:$0xf]  ;;  %v2430_v33 = vld [vmem:[#allocation3] sm:$0xf] }
 0x1b9   : > { %1337 = vst.msk [vmem:[#allocation3 + $0x54] sm:$0xff] %vm3321_vm5, %v1318_v37  ;;  %v1305_v39 = vrot.slane %v1293_v3, 4  ;;  %vm1802_vm2 = vcmask 781312  }
 0x1ba   : > { %1386 = vst.msk [vmem:[#allocation3 + $0x58] sm:$0xf] %vm1378_vm7, %v1369_v0 }
 0x1bb   : > { %1435 = vst.msk [vmem:[#allocation3 + $0x58] sm:$0xf] %vm1427_vm10, %v3256_v20  ;;  %v1314_v40 = vsel %vm1310_vm6, %v1305_v39, %v1293_v3  ;;  %v2545_v52 = vld [vmem:[#allocation3 + $0x4c] sm:$0xf] }
 0x1bc   : > { %1503 = vst.msk [vmem:[#allocation3 + $0x58] sm:$0xff] %vm3336_vm11, %v1484_v13  ;;  %v2533_v13 = vld [vmem:[#allocation7] sm:$0xff] }
 0x1bd   : > { %1552 = vst.msk [vmem:[#allocation3 + $0x5c] sm:$0xf] %vm1544_vm13, %v3260_v22  ;;  %v2474_v55 = vld [vmem:[#allocation3 + $0x50] sm:$0xf] }
 0x1be   : > { %1601 = vst.msk [vmem:[#allocation3 + $0x5c] sm:$0xf] %vm1593_vm14, %v3300_v56 }
 0x1bf   : > { %1333 = vst.msk [vmem:[#allocation3 + $0x24] sm:$0xff] %vm3321_vm5, %v1314_v40  ;;  %v1414_v41 = vpop.permute.xlu1 %1413  ;;  %v1289_v20 = vpop.permute.xlu0 %1288 }
 0x1c0   : > { %1382 = vst.msk [vmem:[#allocation3 + $0x28] sm:$0xf] %vm1378_vm7, %v3286_v43  ;;  %v2546_v45 = vld [vmem:[#allocation3 + $0x50] sm:$0xf0]  ;;  %v1303_v50 = vrot.slane %v1289_v20, 4 }
 0x1c1   : > { %1431 = vst.msk [vmem:[#allocation3 + $0x28] sm:$0xf] %vm1427_vm10, %v1410_v7  ;;  %v2467_v22 = vor.u32 %v2546_v45, %v2466_v44  ;;  %v1482_v7 = vsel %vm1476_vm12, %v1473_v6, %v3288_v47  ;;  %v2534_v45 = vld [vmem:[#allocation7 + $0x8] sm:$0xff] }
 0x1c2   : > { %1499 = vst.msk [vmem:[#allocation3 + $0x28] sm:$0xff] %vm3336_vm11, %v1480_v46  ;;  %v1312_v51 = vsel %vm1310_vm6, %v1303_v50, %v1289_v20  ;;  %v2426_v46 = vld [vmem:[#allocation7 + $0x10] sm:$0xf]  ;;  %v2535_v50 = vld [vmem:[#allocation7 + $0x10] sm:$0x30] }
 0x1c3   : > { %1548 = vst.msk [vmem:[#allocation3 + $0x2c] sm:$0xf] %vm1544_vm13, %v1527_v15  ;;  %1716 = vmatpush.bf16.msrb.mxu1 %v2467_v22  ;;  %v2468_v43 = vld [vmem:[#allocation3 + $0x54] sm:$0xf0]  ;;  %v2427_v22 = vor.u32 %v2535_v50, %v2426_v46 }
 0x1c4   : > { %1597 = vst.msk [vmem:[#allocation3 + $0x2c] sm:$0xf] %vm1593_vm14, %v3294_v49  ;;  %v2471_v54 = vor.u32 %v2545_v52, %v2468_v43 }
 0x1c5   : > { %1331 = vst.msk [vmem:[#allocation3 + $0xc] sm:$0xff] %vm3321_vm5, %v1312_v51  ;;  %v2547_v56 = vld [vmem:[#allocation3 + $0x58] sm:$0xf0] }
 0x1c6   : > { %1380 = vst.msk [vmem:[#allocation3 + $0x10] sm:$0xf] %vm1378_vm7, %v3246_v12  ;;  %1740 = vmatpush.bf16.msrb.mxu2 %v2471_v54  ;;  %v2475_v59 = vor.u32 %v2547_v56, %v2474_v55  ;;  %v2540_v19 = vld [vmem:[#allocation3 + $0x20] sm:$0xf0] }
 0x1c7   : > { %v1406_v60 = vpop.permute.xlu0 %1405 }
 0x1c8   : > { %1764 = vmatpush.bf16.msrb.mxu3 %v2475_v59  ;;  %v1291_v61 = vpop.permute.xlu1 %1290  ;;  %1429 = vst.msk [vmem:[#allocation3 + $0x10] sm:$0xf] %vm1427_vm10, %v1406_v60  ;;  %v1297_v0 = vpop.permute.xlu2 %1296 }
 0x1c9   : > { %v1304_v49 = vrot.slane %v1291_v61, 4  ;;  %1497 = vst.msk [vmem:[#allocation3 + $0x10] sm:$0xff] %vm3336_vm11, %v1478_v62  ;;  %v1307_v12 = vrot.slane %v1297_v0, 4  ;;  %v2444_v29 = vld [vmem:[#allocation3 + $0x24] sm:$0xf0] }
 0x1cb   : > { %v1313_v2 = vsel %vm1310_vm6, %v1304_v49, %v1291_v61  ;;  %v1316_v5 = vsel %vm1310_vm6, %v1307_v12, %v1297_v0  ;;  %v2541_v37 = vld [vmem:[#allocation3 + $0x28] sm:$0xf0] }
 0x1cc   : > { %1332 = vst.msk [vmem:[#allocation3 + $0x18] sm:$0xff] %vm3321_vm5, %v1313_v2  ;;  %v2537_v31 = vld [vmem:[#allocation3 + $0x8] sm:$0xf0] }
 0x1cd   : > { %1381 = vst.msk [vmem:[#allocation3 + $0x1c] sm:$0xf] %vm1378_vm7, %v3275_v35 }
 0x1ce   : > { %1430 = vst.msk [vmem:[#allocation3 + $0x1c] sm:$0xf] %vm1427_vm10, %v3319_v11 }
 0x1cf   : > { %1498 = vst.msk [vmem:[#allocation3 + $0x1c] sm:$0xff] %vm3336_vm11, %v1479_v36 }
 0x1d0   : > { %1547 = vst.msk [vmem:[#allocation3 + $0x20] sm:$0xf] %vm1544_vm13, %v3311_v63  ;;  %v1404_v35 = vpop.permute.xlu2 %1403  ;;  %v2432_v40 = vld [vmem:[#allocation3 + $0xc] sm:$0xf0] }
 0x1d1   : > { %1596 = vst.msk [vmem:[#allocation3 + $0x20] sm:$0xf] %vm1593_vm14, %v3284_v42  ;;  %v1477_v42 = vsel %vm1476_vm12, %v1468_v21, %v3266_v28  ;;  %v1481_v28 = vsel %vm1476_vm12, %v1472_v8, %v3304_v57 }
 0x1d2   : > { %1335 = vst.msk [vmem:[#allocation3 + $0x3c] sm:$0xff] %vm3321_vm5, %v1316_v5 }
 0x1d3   : > { %1384 = vst.msk [vmem:[#allocation3 + $0x40] sm:$0xf] %vm1378_vm7, %v3298_v53  ;;  %v2442_v15 = vld [vmem:[#allocation3 + $0x18] sm:$0xf] }
 0x1d4   : > { %1433 = vst.msk [vmem:[#allocation3 + $0x40] sm:$0xf] %vm1427_vm10, %v1414_v41  ;;  %v2443_v24 = vor.u32 %v2540_v19, %v2442_v15 }
 0x1d5   : > { %1501 = vst.msk [vmem:[#allocation3 + $0x40] sm:$0xff] %vm3336_vm11, %v1482_v7 }
 0x1d6   : > { %1550 = vst.msk [vmem:[#allocation3 + $0x44] sm:$0xf] %vm1544_vm13, %v3317_v10  ;;  %v1570_v10 = vpop.permute.xlu0 %1569  ;;  %v2539_v27 = vld [vmem:[#allocation3 + $0x1c] sm:$0xf] }
 0x1d7   : > { %1599 = vst.msk [vmem:[#allocation3 + $0x44] sm:$0xf] %vm1593_vm14, %v3306_v58  ;;  %v2447_v32 = vor.u32 %v2539_v27, %v2444_v29 }
 0x1d8   : > { %1428 = vst.msk [vmem:[#allocation3 + $0x4] sm:$0xf] %vm1427_vm10, %v1404_v35  ;;  %v1295_v53 = vpop.permute.xlu1 %1294  ;;  %v1523_v63 = vpop.permute.xlu2 %1522  ;;  %v2450_v4 = vld [vmem:[#allocation3 + $0x20] sm:$0xf] }
 0x1d9   : > { %1496 = vst.msk [vmem:[#allocation3 + $0x4] sm:$0xff] %vm3336_vm11, %v1477_v42  ;;  %v1306_v47 = vrot.slane %v1295_v53, 4  ;;  %v2543_v57 = vld [vmem:[#allocation3 + $0x38] sm:$0xf0]  ;;  %v2451_v39 = vor.u32 %v2541_v37, %v2450_v4 }
 0x1da   : > { %1546 = vst.msk [vmem:[#allocation3 + $0x14] sm:$0xf] %vm1544_vm13, %v1523_v63 }
 0x1db   : > { %v1315_v9 = vsel %vm1310_vm6, %v1306_v47, %v1295_v53 }
 0x1dc   : > { %1334 = vst.msk [vmem:[#allocation3 + $0x30] sm:$0xff] %vm3321_vm5, %v1315_v9  ;;  %v2456_v17 = vld [vmem:[#allocation3 + $0x3c] sm:$0xf0] }
 0x1dd   : > { %1383 = vst.msk [vmem:[#allocation3 + $0x34] sm:$0xf] %vm1378_vm7, %v3270_v30 }
 0x1de   : > { %1432 = vst.msk [vmem:[#allocation3 + $0x34] sm:$0xf] %vm1427_vm10, %v3352_v34  ;;  %v2544_v26 = vld [vmem:[#allocation3 + $0x40] sm:$0xf0]  ;;  %v2431_v34 = vor.u32 %v2537_v31, %v2430_v33 }
 0x1df   : > { %1500 = vst.msk [vmem:[#allocation3 + $0x34] sm:$0xff] %vm3336_vm11, %v1481_v28 }
 0x1e0   : > { %1549 = vst.msk [vmem:[#allocation3 + $0x38] sm:$0xf] %vm1544_vm13, %v3331_v25  ;;  %v1521_v58 = vpop.permute.xlu1 %1520  ;;  %v2536_v3 = vld [vmem:[#allocation3 + $0x4] sm:$0xf] }
 0x1e1   : > { %1598 = vst.msk [vmem:[#allocation3 + $0x38] sm:$0xf] %vm1593_vm14, %v3279_v38  ;;  %v2435_v14 = vor.u32 %v2536_v3, %v2432_v40 }
 0x1e2   : > { %1545 = vst.msk [vmem:[#allocation3 + $0x8] sm:$0xf] %vm1544_vm13, %v1521_v58 }
 0x1e3   : > { %1594 = vst.msk [vmem:[#allocation3 + $0x8] sm:$0xf] %vm1593_vm14, %v1570_v10  ;;  %v2454_v30 = vld [vmem:[#allocation3 + $0x30] sm:$0xf] }
 0x1e4   : > { %v2455_v11 = vor.u32 %v2543_v57, %v2454_v30 }
 0x1e6   : > { %1717 = vmatpush.bf16.msrb.mxu1 %v2455_v11  ;;  %v2542_v16 = vld [vmem:[#allocation3 + $0x34] sm:$0xf] }
 0x1e7   : > { %v2459_v18 = vor.u32 %v2542_v16, %v2456_v17 }
 0x1e8   : > { %v1572_v23 = vpop.permute.xlu1 %1571  ;;  %v2462_v25 = vld [vmem:[#allocation3 + $0x38] sm:$0xf] }
 0x1e9   : > { %1595 = vst.msk [vmem:[#allocation3 + $0x14] sm:$0xf] %vm1593_vm14, %v1572_v23  ;;  %1741 = vmatpush.bf16.msrb.mxu2 %v2459_v18  ;;  %v2463_v38 = vor.u32 %v2544_v26, %v2462_v25 }
 0x1ea   : > { %1718 = vmatpush.bf16.msrb.mxu1 %v2443_v24  ;;  %v2438_v41 = vld [vmem:[#allocation3 + $0x8] sm:$0xf] }
 0x1eb   : > { %1765 = vmatpush.bf16.msrb.mxu3 %v2463_v38 }
 0x1ed   : > { %1742 = vmatpush.bf16.msrb.mxu2 %v2447_v32 }
 0x1ee   : > { %1719 = vmatpush.bf16.msrb.mxu1 %v2431_v34 }
 0x1ef   : > { %1766 = vmatpush.bf16.msrb.mxu3 %v2451_v39 }
 0x1f0   : > { %v2538_v20 = vld [vmem:[#allocation3 + $0x10] sm:$0xf0] }
 0x1f1   : > { %2476 = vmatmul.msk.bf16.vlgmr.msrb.gmra.mxu1 %vm810_vm0, %v2533_v13  ;;  %1743 = vmatpush.bf16.msrb.mxu2 %v2435_v14  ;;  %v2439_v44 = vor.u32 %v2538_v20, %v2438_v41 }
 0x1f3   : > { %1767 = vmatpush.bf16.msrb.mxu3 %v2439_v44 }
 0x1f4   : > { %2479 = vmatmul.msk.bf16.vlgmr.msrb.gmra.mxu2 %vm810_vm0, %v2533_v13 }
 0x1f6   : > { %2482 = vmatmul.msk.bf16.vlgmr.msrb.gmra.mxu3 %vm810_vm0, %v2533_v13 }
 0x201   : > { %2477 = vmatmul.msk.bf16.gmra.mxu1 %vm810_vm0, %v2534_v45 }
 0x204   : > { %2480 = vmatmul.msk.bf16.gmra.mxu2 %vm810_vm0, %v2534_v45 }
 0x206   : > { %2483 = vmatmul.msk.bf16.gmra.mxu3 %vm810_vm0, %v2534_v45 }
 0x211   : > { %2478 = vmatmul.msk.bf16.gmra.mxu1 %vm810_vm0, %v2427_v22 }
 0x214   : > { %2481 = vmatmul.msk.bf16.gmra.mxu2 %vm810_vm0, %v2427_v22 }
 0x216   : > { %2484 = vmatmul.msk.bf16.gmra.mxu3 %vm810_vm0, %v2427_v22  ;;  %vm1786_vm0 = vcmask 785408  }
 0x26e   : > { %v1721_v51 = vpop.f32.mrf.mxu1 }
 0x26f   : > { %v1722_v52 = vadd.f32 -2.551515, %v1721_v51 }
 0x271   : > { %1829 = vrot.lane.b32.xlu2 %v1722_v52, %s2785_s4  ;;  %1811 = vst.msk [vmem:[%s3465_s30] sm:$0xff] %vm1810_vm15, %v1722_v52 }
 0x276   : > { %v1723_v43 = vpop.f32.mrf.mxu1 }
 0x277   : > { %v1724_v54 = vadd.f32 -2.551515, %v1723_v43  ;;  %v1745_v48 = vpop.f32.mrf.mxu2 }
 0x278   : > { %v1746_v55 = vadd.f32 -2.551515, %v1745_v48 }
 0x279   : > { %1831 = vrot.lane.b32.xlu0 %v1724_v54, %s2785_s4  ;;  %1878 = vrot.lane.b32.xlu2 %v1722_v52, %s2786_s15  ;;  %v1769_v56 = vpop.f32.mrf.mxu3  ;;  %1812 = vst.msk [vmem:[%s3465_s30 + $0x8] sm:$0xff] %vm1810_vm15, %v1724_v54 }
 0x27a   : > { %v1770_v59 = vadd.f32 -2.551515, %v1769_v56  ;;  %1882 = vrot.lane.b32.xlu1 %v1724_v54, %s2786_s15 }
 0x27c   : > { %1787 = vst.msk [vmem:[#allocation4 + $0x10] sm:$0xff] %vm1786_vm0, %v1770_v59 }
 0x27e   : > { %v1726_v60 = vpop.f32.mrf.mxu1 }
 0x27f   : > { %v1727_v61 = vadd.f32 -2.551515, %v1726_v60  ;;  %v1747_v62 = vpop.f32.mrf.mxu2 }
 0x280   : > { %v1748_v49 = vadd.f32 -2.551515, %v1747_v62 }
 0x281   : > { %1880 = vrot.lane.b32.xlu0 %v1746_v55, %s2786_s15  ;;  %1934 = vrot.lane.b32.xlu2 %v1746_v55, %s2787_s16  ;;  %v1771_v0 = vpop.f32.mrf.mxu3  ;;  %1813 = vst.msk [vmem:[%s3465_s30 + $0x10] sm:$0xff] %vm1810_vm15, %v1727_v61 }
 0x282   : > { %v1772_v1 = vadd.f32 -2.551515, %v1771_v0  ;;  %1833 = vrot.lane.b32.xlu1 %v1727_v61, %s2785_s4 }
 0x283   : > { %v1997_v2 = vld [vmem:[#allocation4 + $0x10] sm:$0xff] }
 0x284   : > { %1790 = vst.msk [vmem:[#allocation4 + $0x28] sm:$0xff] %vm1786_vm0, %v1772_v1 }
 0x286   : > { %v1728_v12 = vpop.f32.mrf.mxu1 }
 0x287   : > { %v1729_v36 = vadd.f32 -2.551515, %v1728_v12  ;;  %v1750_v5 = vpop.f32.mrf.mxu2 }
 0x288   : > { %v1751_v6 = vadd.f32 -2.551515, %v1750_v5 }
 0x289   : > { %2022 = vrot.lane.b32.xlu0 %v1997_v2, %s2788_s6  ;;  %1971 = vrot.lane.b32.xlu2 %v1746_v55, %s2789_s7  ;;  %v1774_v35 = vpop.f32.mrf.mxu3  ;;  %1814 = vst.msk [vmem:[%s3465_s30 + $0x18] sm:$0xff] %vm1810_vm15, %v1729_v36 }
 0x28a   : > { %2024 = vrot.lane.b32.xlu1 %v1748_v49, %s2788_s6  ;;  %v1775_v21 = vadd.f32 -2.551515, %v1774_v35 }
 0x28b   : > { %v2065_v57 = vld [vmem:[#allocation4 + $0x28] sm:$0xff] }
 0x28c   : > { %1793 = vst.msk [vmem:[#allocation4 + $0x40] sm:$0xff] %vm1786_vm0, %v1775_v21 }
 0x28e   : > { %v1731_v53 = vpop.f32.mrf.mxu1 }
 0x28f   : > { %v1752_v7 = vpop.f32.mrf.mxu2  ;;  %v1732_v63 = vadd.f32 -2.551515, %v1731_v53 }
 0x290   : > { %v1753_v42 = vadd.f32 -2.551515, %v1752_v7 }
 0x291   : > { %1886 = vrot.lane.b32.xlu0 %v1727_v61, %s2786_s15  ;;  %2020 = vrot.lane.b32.xlu2 %v1746_v55, %s2788_s6  ;;  %v1776_v47 = vpop.f32.mrf.mxu3  ;;  %1815 = vst.msk [vmem:[%s3465_s30 + $0x20] sm:$0xff] %vm1810_vm15, %v1732_v63 }
 0x292   : > { %1888 = vrot.lane.b32.xlu1 %v1751_v6, %s2786_s15  ;;  %v1777_v8 = vadd.f32 -2.551515, %v1776_v47 }
 0x293   : > { %v2001_v10 = vld [vmem:[#allocation4 + $0x40] sm:$0xff] }
 0x294   : > { %1796 = vst.msk [vmem:[#allocation4 + $0x58] sm:$0xff] %vm1786_vm0, %v1777_v8 }
 0x296   : > { %v1733_v9 = vpop.f32.mrf.mxu1 }
 0x297   : > { %v1734_v28 = vadd.f32 -2.551515, %v1733_v9  ;;  %v1755_v58 = vpop.f32.mrf.mxu2 }
 0x298   : > { %v1756_v15 = vadd.f32 -2.551515, %v1755_v58 }
 0x299   : > { %1936 = vrot.lane.b32.xlu0 %v1748_v49, %s2787_s16  ;;  %2076 = vrot.lane.b32.xlu2 %v1997_v2, %s2790_s8  ;;  %1800 = vst [vmem:[#allocation4 + $0x78] sm:$0xf] %v1734_v28  ;;  %v1779_v17 = vpop.f32.mrf.mxu3 }
 0x29a   : > { %1938 = vrot.lane.b32.xlu1 %v1751_v6, %s2787_s16  ;;  %v1780_v19 = vadd.f32 -2.551515, %v1779_v17 }
 0x29b   : > { %v2003_v26 = vld [vmem:[#allocation4 + $0x58] sm:$0xff] }
 0x29c   : > { %1799 = vst.msk [vmem:[#allocation4 + $0x70] sm:$0xff] %vm1786_vm0, %v1780_v19 }
 0x29f   : > { %v1757_v11 = vpop.f32.mrf.mxu2 }
 0x2a0   : > { %v1809_v30 = vld [vmem:[#allocation4 + $0x78] sm:$0xf]  ;;  %v1758_v16 = vadd.f32 -2.551515, %v1757_v11 }
 0x2a1   : > { %1973 = vrot.lane.b32.xlu0 %v1748_v49, %s2789_s7  ;;  %2113 = vrot.lane.b32.xlu2 %v1997_v2, %s2791_s10  ;;  %1816 = vst.msk [vmem:[%s3465_s30 + $0x28] sm:$0xf] %vm1140_vm1, %v1809_v30  ;;  %v1781_v18 = vpop.f32.mrf.mxu3  ;;  %v1822_v24 = vld [vmem:[#allocation4 + $0x78] sm:$0xf] }
 0x2a2   : > { %1975 = vrot.lane.b32.xlu1 %v1751_v6, %s2789_s7  ;;  %1801 = vst [vmem:[#allocation4 + $0x80] sm:$0xf] %v1758_v16  ;;  %v1782_v23 = vadd.f32 -2.551515, %v1781_v18  ;;  %v1864_v38 = vld [vmem:[#allocation4 + $0x78] sm:$0xf] }
 0x2a3   : > { %v2005_v39 = vld [vmem:[#allocation4 + $0x70] sm:$0xff] }
 0x2a4   : > { %1803 = vst.msk [vmem:[#allocation4 + $0x88] sm:$0xf] %vm1802_vm2, %v1782_v23 }
 0x2a9   : > { %2078 = vrot.lane.b32.xlu0 %v2065_v57, %s2790_s8  ;;  %1884 = vrot.lane.b32.xlu2 %v1748_v49, %s2786_s15  ;;  %v1865_v31 = vld [vmem:[#allocation4 + $0x80] sm:$0xf] }
 0x2aa   : > { %2030 = vrot.lane.b32.xlu1 %v2001_v10, %s2788_s6  ;;  %v1927_v4 = vld [vmem:[#allocation4 + $0x80] sm:$0xf] }
 0x2ab   : > { %v1964_v33 = vld [vmem:[#allocation4 + $0x80] sm:$0xf]  ;;  %v2007_v13 = vld [vmem:[#allocation4 + $0x88] sm:$0xf] }
 0x2ac   : > { %v2006_v44 = vld [vmem:[#allocation4 + $0x80] sm:$0xf]  ;;  %v2069_v45 = vld [vmem:[#allocation4 + $0x88] sm:$0xf] }
 0x2ad   : > { %v2106_v52 = vld [vmem:[#allocation4 + $0x88] sm:$0xf] }
 0x2b1   : > { %2115 = vrot.lane.b32.xlu0 %v2065_v57, %s2791_s10  ;;  %2026 = vrot.lane.b32.xlu2 %v2065_v57, %s2788_s6 }
 0x2b2   : > { %2080 = vrot.lane.b32.xlu1 %v2001_v10, %s2790_s8 }
 0x2b9   : > { %2028 = vrot.lane.b32.xlu0 %v1751_v6, %s2788_s6  ;;  %1835 = vrot.lane.b32.xlu2 %v1729_v36, %s2785_s4 }
 0x2ba   : > { %2117 = vrot.lane.b32.xlu1 %v2001_v10, %s2791_s10 }
 0x2c1   : > { %1837 = vrot.lane.b32.xlu0 %v1732_v63, %s2785_s4  ;;  %1890 = vrot.lane.b32.xlu2 %v1729_v36, %s2786_s15 }
 0x2c2   : > { %1894 = vrot.lane.b32.xlu1 %v1732_v63, %s2786_s15 }
 0x2c9   : > { %1892 = vrot.lane.b32.xlu0 %v1753_v42, %s2786_s15  ;;  %1940 = vrot.lane.b32.xlu2 %v1753_v42, %s2787_s16 }
 0x2ca   : > { %1839 = vrot.lane.b32.xlu1 %v1822_v24, %s2785_s4 }
 0x2cb   : > { %v1830_v25 = vpop.permute.xlu2 %1829 }
 0x2cc   : > { %2485 = vst.msk [vmem:[%s3465_s30 + $0x30] sm:$0xff] %vm1810_vm15, %v1830_v25 }
 0x2d1   : > { %2034 = vrot.lane.b32.xlu0 %v2003_v26, %s2788_s6  ;;  %1977 = vrot.lane.b32.xlu2 %v1753_v42, %s2789_s7 }
 0x2d2   : > { %2036 = vrot.lane.b32.xlu1 %v1756_v15, %s2788_s6 }
 0x2d3   : > { %v1879_v27 = vpop.permute.xlu2 %1878 }
 0x2d9   : > { %2032 = vrot.lane.b32.xlu2 %v1753_v42, %s2788_s6  ;;  %1898 = vrot.lane.b32.xlu0 %v1864_v38, %s2786_s15 }
 0x2da   : > { %1900 = vrot.lane.b32.xlu1 %v1865_v31, %s2786_s15 }
 0x2db   : > { %v1935_v29 = vpop.permute.xlu2 %1934 }
 0x2dc   : > { %2497 = vst.msk [vmem:[%s3465_s30 + $0x90] sm:$0xff] %vm1810_vm15, %v1935_v29 }
 0x2e1   : > { %2082 = vrot.lane.b32.xlu2 %v2003_v26, %s2790_s8  ;;  %1942 = vrot.lane.b32.xlu0 %v1756_v15, %s2787_s16 }
 0x2e2   : > { %1944 = vrot.lane.b32.xlu1 %v1927_v4, %s2787_s16 }
 0x2e3   : > { %v1972_v32 = vpop.permute.xlu2 %1971 }
 0x2e4   : > { %2503 = vst.msk [vmem:[%s3465_s30 + $0xc0] sm:$0xff] %vm1810_vm15, %v1972_v32 }
 0x2e9   : > { %1896 = vrot.lane.b32.xlu2 %v1756_v15, %s2786_s15  ;;  %1979 = vrot.lane.b32.xlu0 %v1756_v15, %s2789_s7 }
 0x2ea   : > { %1981 = vrot.lane.b32.xlu1 %v1964_v33, %s2789_s7 }
 0x2eb   : > { %v1832_v34 = vpop.permute.xlu0 %1831  ;;  %v2021_v37 = vpop.permute.xlu2 %2020 }
 0x2ec   : > { %2486 = vst.msk [vmem:[%s3465_s30 + $0x38] sm:$0xff] %vm1810_vm15, %v1832_v34  ;;  %v1883_v3 = vpop.permute.xlu1 %1882 }
 0x2f1   : > { %2038 = vrot.lane.b32.xlu2 %v2005_v39, %s2788_s6  ;;  %2084 = vrot.lane.b32.xlu0 %v2005_v39, %s2790_s8 }
 0x2f2   : > { %2042 = vrot.lane.b32.xlu1 %v2007_v13, %s2788_s6 }
 0x2f3   : > { %v1881_v40 = vpop.permute.xlu0 %1880  ;;  %v2077_v14 = vpop.permute.xlu2 %2076 }
 0x2f4   : > { %v1903_v41 = vsel %vm1902_vm3, %v1879_v27, %v1881_v40  ;;  %2515 = vst.msk [vmem:[%s3465_s30 + $0x120] sm:$0xff] %vm1810_vm15, %v2077_v14  ;;  %v1834_v20 = vpop.permute.xlu1 %1833 }
 0x2f5   : > { %2491 = vst.msk [vmem:[%s3465_s30 + $0x60] sm:$0xff] %vm1810_vm15, %v1903_v41 }
 0x2f6   : > { %2487 = vst.msk [vmem:[%s3465_s30 + $0x40] sm:$0xff] %vm1810_vm15, %v1834_v20 }
 0x2f9   : > { %2119 = vrot.lane.b32.xlu2 %v2003_v26, %s2791_s10  ;;  %2040 = vrot.lane.b32.xlu0 %v2006_v44, %s2788_s6 }
 0x2fa   : > { %2086 = vrot.lane.b32.xlu1 %v2069_v45, %s2790_s8 }
 0x2fb   : > { %v2023_v46 = vpop.permute.xlu0 %2022  ;;  %v2114_v50 = vpop.permute.xlu2 %2113 }
 0x2fc   : > { %v2045_v22 = vsel %vm2044_vm4, %v2021_v37, %v2023_v46  ;;  %2521 = vst.msk [vmem:[%s3465_s30 + $0x150] sm:$0xff] %vm1810_vm15, %v2114_v50  ;;  %v2025_v51 = vpop.permute.xlu1 %2024 }
 0x2fd   : > { %2509 = vst.msk [vmem:[%s3465_s30 + $0xf0] sm:$0xff] %vm1810_vm15, %v2045_v22 }
 0x301   : > { %2121 = vrot.lane.b32.xlu0 %v2005_v39, %s2791_s10 }
 0x302   : > { %2123 = vrot.lane.b32.xlu1 %v2106_v52, %s2791_s10 }
 0x303   : > { %v1887_v43 = vpop.permute.xlu0 %1886  ;;  %v1885_v54 = vpop.permute.xlu2 %1884 }
 0x304   : > { %v1904_v48 = vsel %vm1902_vm3, %v1883_v3, %v1885_v54  ;;  %v1889_v55 = vpop.permute.xlu1 %1888 }
 0x305   : > { %2492 = vst.msk [vmem:[%s3465_s30 + $0x68] sm:$0xff] %vm1810_vm15, %v1904_v48  ;;  %v1905_v56 = vsel %vm1902_vm3, %v1887_v43, %v1889_v55 }
 0x306   : > { %2493 = vst.msk [vmem:[%s3465_s30 + $0x70] sm:$0xff] %vm1810_vm15, %v1905_v56 }
 0x30b   : > { %v1937_v59 = vpop.permute.xlu0 %1936  ;;  %v2027_v60 = vpop.permute.xlu2 %2026 }
 0x30c   : > { %2498 = vst.msk [vmem:[%s3465_s30 + $0x98] sm:$0xff] %vm1810_vm15, %v1937_v59  ;;  %v2046_v61 = vsel %vm2044_vm4, %v2025_v51, %v2027_v60  ;;  %v1939_v62 = vpop.permute.xlu1 %1938 }
 0x30d   : > { %2510 = vst.msk [vmem:[%s3465_s30 + $0xf8] sm:$0xff] %vm1810_vm15, %v2046_v61 }
 0x30e   : > { %2499 = vst.msk [vmem:[%s3465_s30 + $0xa0] sm:$0xff] %vm1810_vm15, %v1939_v62 }
 0x313   : > { %v1974_v49 = vpop.permute.xlu0 %1973  ;;  %v1836_v0 = vpop.permute.xlu2 %1835 }
 0x314   : > { %2504 = vst.msk [vmem:[%s3465_s30 + $0xc8] sm:$0xff] %vm1810_vm15, %v1974_v49  ;;  %v1976_v1 = vpop.permute.xlu1 %1975 }
 0x315   : > { %2488 = vst.msk [vmem:[%s3465_s30 + $0x48] sm:$0xff] %vm1810_vm15, %v1836_v0 }
 0x316   : > { %2505 = vst.msk [vmem:[%s3465_s30 + $0xd0] sm:$0xff] %vm1810_vm15, %v1976_v1 }
 0x31b   : > { %v2079_v2 = vpop.permute.xlu0 %2078  ;;  %v1891_v12 = vpop.permute.xlu2 %1890 }
 0x31c   : > { %2516 = vst.msk [vmem:[%s3465_s30 + $0x128] sm:$0xff] %vm1810_vm15, %v2079_v2  ;;  %v2031_v36 = vpop.permute.xlu1 %2030 }
 0x323   : > { %v2116_v5 = vpop.permute.xlu0 %2115  ;;  %v1941_v6 = vpop.permute.xlu2 %1940 }
 0x324   : > { %2522 = vst.msk [vmem:[%s3465_s30 + $0x158] sm:$0xff] %vm1810_vm15, %v2116_v5  ;;  %v2081_v35 = vpop.permute.xlu1 %2080 }
 0x325   : > { %2500 = vst.msk [vmem:[%s3465_s30 + $0xa8] sm:$0xff] %vm1810_vm15, %v1941_v6 }
 0x326   : > { %2517 = vst.msk [vmem:[%s3465_s30 + $0x130] sm:$0xff] %vm1810_vm15, %v2081_v35 }
 0x32b   : > { %v2029_v21 = vpop.permute.xlu0 %2028  ;;  %v1978_v7 = vpop.permute.xlu2 %1977 }
 0x32c   : > { %2506 = vst.msk [vmem:[%s3465_s30 + $0xd8] sm:$0xff] %vm1810_vm15, %v1978_v7  ;;  %v2047_v42 = vsel %vm2044_vm4, %v2029_v21, %v2031_v36  ;;  %v2118_v53 = vpop.permute.xlu1 %2117 }
 0x32d   : > { %2511 = vst.msk [vmem:[%s3465_s30 + $0x100] sm:$0xff] %vm1810_vm15, %v2047_v42 }
 0x32e   : > { %2523 = vst.msk [vmem:[%s3465_s30 + $0x160] sm:$0xff] %vm1810_vm15, %v2118_v53 }
 0x333   : > { %v1838_v47 = vpop.permute.xlu0 %1837  ;;  %v2033_v63 = vpop.permute.xlu2 %2032 }
 0x334   : > { %2489 = vst.msk [vmem:[%s3465_s30 + $0x50] sm:$0xff] %vm1810_vm15, %v1838_v47  ;;  %v1895_v8 = vpop.permute.xlu1 %1894 }
 0x33b   : > { %v1893_v9 = vpop.permute.xlu0 %1892  ;;  %v2083_v28 = vpop.permute.xlu2 %2082 }
 0x33c   : > { %v1906_v58 = vsel %vm1902_vm3, %v1891_v12, %v1893_v9  ;;  %2518 = vst.msk [vmem:[%s3465_s30 + $0x138] sm:$0xff] %vm1810_vm15, %v2083_v28  ;;  %v1840_v10 = vpop.permute.xlu1 %1839 }
 0x33d   : > { %2494 = vst.msk [vmem:[%s3465_s30 + $0x78] sm:$0xff] %vm1810_vm15, %v1906_v58 }
 0x33e   : > { %2490 = vst.msk [vmem:[%s3465_s30 + $0x58] sm:$0xf] %vm1140_vm1, %v1840_v10 }
 0x343   : > { %v2035_v30 = vpop.permute.xlu0 %2034  ;;  %v1897_v57 = vpop.permute.xlu2 %1896 }
 0x344   : > { %v2048_v11 = vsel %vm2044_vm4, %v2033_v63, %v2035_v30  ;;  %v1907_v15 = vsel %vm1902_vm3, %v1895_v8, %v1897_v57  ;;  %v2037_v16 = vpop.permute.xlu1 %2036 }
 0x345   : > { %2512 = vst.msk [vmem:[%s3465_s30 + $0x108] sm:$0xff] %vm1810_vm15, %v2048_v11 }
 0x346   : > { %2495 = vst.msk [vmem:[%s3465_s30 + $0x80] sm:$0xff] %vm1810_vm15, %v1907_v15 }
 0x34b   : > { %v2039_v17 = vpop.permute.xlu2 %2038  ;;  %v1899_v18 = vpop.permute.xlu0 %1898 }
 0x34c   : > { %v2049_v19 = vsel %vm2044_vm4, %v2037_v16, %v2039_v17  ;;  %v1901_v23 = vpop.permute.xlu1 %1900 }
 0x34d   : > { %2513 = vst.msk [vmem:[%s3465_s30 + $0x110] sm:$0xff] %vm1810_vm15, %v2049_v19  ;;  %v1908_v24 = vsel %vm1902_vm3, %v1899_v18, %v1901_v23 }
 0x34e   : > { %2496 = vst.msk [vmem:[%s3465_s30 + $0x88] sm:$0xf] %vm1140_vm1, %v1908_v24 }
 0x353   : > { %v2120_v25 = vpop.permute.xlu2 %2119  ;;  %v1943_v26 = vpop.permute.xlu0 %1942 }
 0x354   : > { %2524 = vst.msk [vmem:[%s3465_s30 + $0x168] sm:$0xff] %vm1810_vm15, %v2120_v25  ;;  %v1945_v27 = vpop.permute.xlu1 %1944 }
 0x355   : > { %2501 = vst.msk [vmem:[%s3465_s30 + $0xb0] sm:$0xff] %vm1810_vm15, %v1943_v26 }
 0x356   : > { %2502 = vst.msk [vmem:[%s3465_s30 + $0xb8] sm:$0xf] %vm1140_vm1, %v1945_v27 }
 0x35b   : > { %v1980_v38 = vpop.permute.xlu0 %1979 }
 0x35c   : > { %2507 = vst.msk [vmem:[%s3465_s30 + $0xe0] sm:$0xff] %vm1810_vm15, %v1980_v38  ;;  %v1982_v31 = vpop.permute.xlu1 %1981 }
 0x35d   : > { %2508 = vst.msk [vmem:[%s3465_s30 + $0xe8] sm:$0xf] %vm1140_vm1, %v1982_v31 }
 0x363   : > { %v2085_v29 = vpop.permute.xlu0 %2084 }
 0x364   : > { %2519 = vst.msk [vmem:[%s3465_s30 + $0x140] sm:$0xff] %vm1810_vm15, %v2085_v29  ;;  %v2043_v4 = vpop.permute.xlu1 %2042 }
 0x36b   : > { %v2041_v32 = vpop.permute.xlu0 %2040 }
 0x36c   : > { %v2050_v33 = vsel %vm2044_vm4, %v2041_v32, %v2043_v4  ;;  %v2087_v34 = vpop.permute.xlu1 %2086 }
 0x36d   : > { %2514 = vst.msk [vmem:[%s3465_s30 + $0x118] sm:$0xf] %vm1140_vm1, %v2050_v33 }
 0x36e   : > { %2520 = vst.msk [vmem:[%s3465_s30 + $0x148] sm:$0xf] %vm1140_vm1, %v2087_v34 }
 0x373   : > { %v2122_v37 = vpop.permute.xlu0 %2121 }
 0x374   : > { %v2124_v3 = vpop.permute.xlu1 %2123  ;;  %2525 = vst.msk [vmem:[%s3465_s30 + $0x170] sm:$0xff] %vm1810_vm15, %v2122_v37 }
 0x375   : > { %2526 = vst.msk [vmem:[%s3465_s30 + $0x178] sm:$0xf] %vm1140_vm1, %v2124_v3 }
 0x376 PF: > { %p14_p4 = scmp.ge.s32.totalorder %s2861_s5, 4   ;;  %s3659_s12 = smov %s2762_s13 }
 0x377   : > { %s3660_s13 = smov %s2766_s14  ;;  %s3661_s14 = smov %s2872_s9 }
 0x378   : > { %s3662_s15 = smov %s2861_s5  ;;  %16 = sbr.rel (!%p14_p4) target bundleno = 4 (0x4), region = 89 }
 0x37d   :  { %2162 = vsyncpa [#allocation6], 1 }
 0x37e   :  { %2164 = vsyncpa [#allocation6 + $0x1], 1 }
 0x37f   :  { %2165 = vsyncpa [#allocation8], 1 }

</bundles_post_ra>
